<compile_context>
chip_gen: v7x
topology: tpu7x:2x2x1
jax: 0.10.0
libtpu: 0.0.40
codegen_flags: <defaults>
</compile_context>

<pallas_src>
import functools

import numpy as np
import jax
import jax.numpy as jnp
from jax.experimental import pallas as pl
from jax.experimental.pallas import tpu as pltpu


def _full_spec(shape):
    """Full-array block (always satisfies the (8,128) rule)."""
    return pl.BlockSpec(shape, lambda i: (0,) * len(shape))


def _ceil_to(v, m):
    return -(-int(v) // m) * m


# ----------------------------------------------------------------------------
# Fused kernel: RevIN + all N-BEATS blocks + output head.
# ----------------------------------------------------------------------------
def _nbeats_fused_kernel(x_ref,
                         w0_ref, b0_ref, w1_ref, b1_ref, w2_ref, b2_ref,
                         w3_ref, b3_ref, wo_ref, bo_ref, g_ref,
                         wc_ref, hb_ref,
                         out_ref, *, n_blocks, input_size, horizon, enc_in,
                         batch, eps):
    f32 = jnp.float32
    bf16 = jnp.bfloat16

    # ---- RevIN 'norm' (mode='revin', affine=False): per-row stats over time.
    x = x_ref[...]                                              # [R, L] raw (time order)
    mean = jnp.mean(x, axis=-1, keepdims=True)
    var = jnp.mean(jnp.square(x - mean), axis=-1, keepdims=True)   # unbiased=False
    nrm = (x - mean) * jax.lax.rsqrt(var + eps)                 # == insample_y
    rows = nrm.shape[0]

    # Combined state z = [residual (L lanes) | forecast (h lanes)].
    # Forecast accumulator seeded with insample_y[:, -1:] (broadcast over horizon).
    z = jnp.concatenate(
        [nrm, jnp.broadcast_to(nrm[:, input_size - 1:input_size], (rows, horizon))],
        axis=-1)                                                # [R, L+h] f32

    # ---- N-BEATS blocks: 6 MXU matmuls each, bf16 operands, f32 accumulate.
    # MLP = L0(in->H), [L1+ReLU, L2+ReLU, L3+ReLU], Lout (matches the PyTorch
    # layer list: no activation after L0).  The flip / sign / split handling is
    # folded into the packed weights (see pack_blocks).
    for i in range(n_blocks):
        hdd = jnp.dot(z.astype(bf16), w0_ref[i],
                      preferred_element_type=f32) + b0_ref[i]
        hdd = jnp.maximum(jnp.dot(hdd.astype(bf16), w1_ref[i],
                                  preferred_element_type=f32) + b1_ref[i], 0.0)
        hdd = jnp.maximum(jnp.dot(hdd.astype(bf16), w2_ref[i],
                                  preferred_element_type=f32) + b2_ref[i], 0.0)
        hdd = jnp.maximum(jnp.dot(hdd.astype(bf16), w3_ref[i],
                                  preferred_element_type=f32) + b3_ref[i], 0.0)
        theta = jnp.dot(hdd.astype(bf16), wo_ref[i],
                        preferred_element_type=f32) + bo_ref[i]   # [R, smax+fmax]
        # block-diagonal basis: resid -= theta_b @ BB_flip ; fcast += theta_f @ FB
        z = z + jnp.dot(theta.astype(bf16), g_ref[i], preferred_element_type=f32)

    # ---- Output head on forecast horizon step 0:
    #   y[b, c] = sum_f step0[b, c, f] * head_w[f] + head_b
    # as a per-batch sublane segment reduction of (fc0 * wc), linear in batch.
    fc0 = z[:, input_size:input_size + 1]                       # [R, 1]
    a = fc0 * wc_ref[...]                                       # [R, channels]
    y_rows = []
    for bi in range(batch):                                     # static unroll
        seg = a[bi * enc_in:(bi + 1) * enc_in, :]               # [enc_in, channels]
        y_rows.append(jnp.sum(seg, axis=0, keepdims=True))      # XLU sublane reduce
    y = jnp.concatenate(y_rows, axis=0) if batch > 1 else y_rows[0]
    y = jnp.maximum(y + hb_ref[...], 0.0)                       # dense_feat bias + ReLU
    m = jnp.max(y, axis=-1, keepdims=True)
    e = jnp.exp(y - m)
    s = e / jnp.sum(e, axis=-1, keepdims=True)                  # softmax(dim=-1)
    out_ref[...] = jnp.concatenate([jnp.zeros_like(s[:, :1]), s], axis=1)


# ----------------------------------------------------------------------------
# Full forward (batch_w=None, decompose_forecast=False).
# ----------------------------------------------------------------------------
def nbeats_forward(batch_x, packed, wc, head_bias, eps=1e-5):
    b, feats, ch, l = batch_x.shape
    enc_in = ch * feats
    rows = b * enc_in
    n_blocks = packed[0].shape[0]
    horizon = packed[-1].shape[-1] - l          # G is [n, smax+fmax, L+h]

    # permute(0,3,2,1) + 'b l c f -> b l (c f)' + permute(0,2,1) + reshape
    #   == [b, c, f, l] row-major flattened to [rows, L]  (no flip: folded in weights)
    x_rows = jnp.transpose(batch_x, (0, 2, 1, 3)).reshape(rows, l).astype(jnp.float32)

    args = (x_rows,) + tuple(packed) + (wc, head_bias)
    nc = ch + 1
    kern = functools.partial(_nbeats_fused_kernel, n_blocks=n_blocks,
                             input_size=l, horizon=horizon, enc_in=enc_in,
                             batch=b, eps=eps)
    return pl.pallas_call(
        kern,
        grid=(1,),
        in_specs=[_full_spec(a.shape) for a in args],
        out_specs=_full_spec((b, nc)),
        out_shape=jax.ShapeDtypeStruct((b, nc), jnp.float32),
        compiler_params=pltpu.CompilerParams(dimension_semantics=("arbitrary",)),
    )(*args)


# ----------------------------------------------------------------------------
# Parameter packing.
#  - W0 rows reversed (folds the time flip of the MLP input).
#  - W0 padded with zero rows for the forecast lanes of the combined state.
#  - wo/bo split at the theta boundary and re-packed into one lane-padded block.
#  - G = block-diag(-flip(BB, time), FB): one basis matmul updates both halves of
#    the combined state; the backcast subtraction sign is folded into -BB.
#  - MXU operands stored as bf16; biases stay f32.
# Zero padding is exact: padded wo/bo columns make padded theta entries 0, which
# hit all-zero G rows.
# ----------------------------------------------------------------------------
def pack_blocks(blocks, input_size, h, hidden):
    n = len(blocks)
    smax = _ceil_to(max(int(bb.shape[0]) for _, bb, _, _ in blocks), 8)
    fmax = _ceil_to(max(int(fb.shape[0]) for _, _, fb, _ in blocks), 8)
    lh = input_size + h

    def z(*s):
        return np.zeros(s, np.float32)

    W0, B0 = z(n, lh, hidden), z(n, 1, hidden)
    W1, B1 = z(n, hidden, hidden), z(n, 1, hidden)
    W2, B2 = z(n, hidden, hidden), z(n, 1, hidden)
    W3, B3 = z(n, hidden, hidden), z(n, 1, hidden)
    WO, BO = z(n, hidden, smax + fmax), z(n, 1, smax + fmax)
    G = z(n, smax + fmax, lh)
    for i, (p, bb, fb, split) in enumerate(blocks):
        bb = np.asarray(bb, np.float32)
        fb = np.asarray(fb, np.float32)
        s, fs = int(bb.shape[0]), int(fb.shape[0])
        assert s == split, "backcast basis rows must equal the theta split"
        W0[i, :input_size, :] = np.asarray(p['w0'])[::-1, :]     # fold time flip
        B0[i] = np.asarray(p['b0'])
        W1[i], B1[i] = np.asarray(p['w1']), np.asarray(p['b1'])
        W2[i], B2[i] = np.asarray(p['w2']), np.asarray(p['b2'])
        W3[i], B3[i] = np.asarray(p['w3']), np.asarray(p['b3'])
        wo, bo = np.asarray(p['wo']), np.asarray(p['bo'])
        WO[i, :, :s], BO[i, 0, :s] = wo[:, :split], bo[0, :split]
        WO[i, :, smax:smax + fs] = wo[:, split:]
        BO[i, 0, smax:smax + fs] = bo[0, split:]
        G[i, :s, :input_size] = -bb[:, ::-1]                     # flipped + sign-folded
        G[i, smax:smax + fs, input_size:] = fb

    def mx(a):   # MXU operand dtype
        return jnp.asarray(a, dtype=jnp.bfloat16)

    def fp(a):
        return jnp.asarray(a, dtype=jnp.float32)

    return (mx(W0), fp(B0), mx(W1), fp(B1), mx(W2), fp(B2), mx(W3), fp(B3),
            mx(WO), fp(BO), mx(G))


def make_head_operands(batch, channels, features, head_w, head_b):
    """Per-row channel/feature weighting so dense_feat becomes a segment reduce."""
    enc_in = channels * features
    rows = batch * enc_in
    r = np.arange(rows)
    ci = (r % enc_in) // features
    fi = r % features
    hw = np.asarray(head_w, np.float32)
    wc = np.zeros((rows, channels), np.float32)
    wc[r, ci] = hw[fi]                                           # [rows, channels]
    hb = np.asarray(head_b, np.float32).reshape(1, 1)
    return jnp.asarray(wc), jnp.asarray(hb)


# ----------------------------------------------------------------------------
# Pure-JAX reference (mirrors the PyTorch forward) for correctness checking.
# matmul_dtype=bf16 mirrors the kernel's MXU operand cast (f32 accumulation).
# ----------------------------------------------------------------------------
def nbeats_reference(batch_x, blocks, head_w, head_b, *, features, h, eps=1e-5,
                     matmul_dtype=jnp.float32):
    b, f, c, l = batch_x.shape
    enc_in = c * f
    x = jnp.transpose(batch_x, (0, 3, 2, 1)).reshape(b, l, enc_in).astype(jnp.float32)
    mean = jnp.mean(x, axis=1, keepdims=True)
    var = jnp.mean((x - mean) ** 2, axis=1, keepdims=True)
    x = (x - mean) / jnp.sqrt(var + eps)
    insample_y = jnp.transpose(x, (0, 2, 1)).reshape(b * enc_in, l)
    residuals = jnp.flip(insample_y, axis=-1)
    forecast = insample_y[:, -1:]

    def mm(a, w):
        return jnp.dot(a.astype(matmul_dtype), jnp.asarray(w).astype(matmul_dtype),
                       preferred_element_type=jnp.float32)

    for (p, bb, fb, split) in blocks:
        hdd = mm(residuals, p['w0']) + p['b0']
        hdd = jnp.maximum(mm(hdd, p['w1']) + p['b1'], 0.0)
        hdd = jnp.maximum(mm(hdd, p['w2']) + p['b2'], 0.0)
        hdd = jnp.maximum(mm(hdd, p['w3']) + p['b3'], 0.0)
        theta = mm(hdd, p['wo']) + p['bo']
        residuals = residuals - mm(theta[:, :split], bb)
        forecast = forecast + mm(theta[:, split:], fb)
    forecast = forecast.reshape(b, enc_in, h)
    step0 = forecast[:, :, 0].reshape(b, c, features)
    y = jnp.sum(step0 * jnp.asarray(head_w).reshape(1, 1, features), axis=-1)
    y = y + jnp.asarray(head_b).reshape(1, 1)
    y = jnp.maximum(y, 0.0)
    s = jax.nn.softmax(y, axis=-1)
    return jnp.concatenate([jnp.zeros_like(s[:, :1]), s], axis=1)


# ----------------------------------------------------------------------------
# Deterministic synthetic parameters / bases (match the module's constructions).
# ----------------------------------------------------------------------------
def make_mlp_params(key, input_size, hidden, n_theta):
    ks = jax.random.split(key, 10)

    def w(k, fan_in, fan_out):
        return jax.random.normal(k, (fan_in, fan_out), jnp.float32) / np.sqrt(fan_in)

    def bias(k, fan_out):
        return jax.random.normal(k, (1, fan_out), jnp.float32) * 0.01

    return dict(
        w0=w(ks[0], input_size, hidden), b0=bias(ks[1], hidden),
        w1=w(ks[2], hidden, hidden),     b1=bias(ks[3], hidden),
        w2=w(ks[4], hidden, hidden),     b2=bias(ks[5], hidden),
        w3=w(ks[6], hidden, hidden),     b3=bias(ks[7], hidden),
        wo=w(ks[8], hidden, n_theta),    bo=bias(ks[9], n_theta),
    )


def make_identity_basis(L, h):
    return np.eye(L, dtype=np.float32), np.eye(h, dtype=np.float32), L


def make_trend_basis(n_poly, L, h):
    p = n_poly + 1
    bb = np.concatenate([np.power(np.arange(L, dtype=float) / L, i)[None, :]
                         for i in range(p)]).astype(np.float32)
    fb = np.concatenate([np.power(np.arange(h, dtype=float) / h, i)[None, :]
                         for i in range(p)]).astype(np.float32)
    return bb, fb, p


def make_seasonality_basis(harmonics, L, h):
    frequency = np.append(np.zeros(1, dtype=float),
                          np.arange(harmonics, harmonics / 2 * h, dtype=float) / harmonics)[None, :]
    bgrid = -2 * np.pi * (np.arange(L, dtype=float)[:, None] / h) * frequency
    fgrid = 2 * np.pi * (np.arange(h, dtype=float)[:, None] / h) * frequency
    bb = np.concatenate([np.cos(bgrid).T, np.sin(bgrid).T], axis=0).astype(np.float32)
    fb = np.concatenate([np.cos(fgrid).T, np.sin(fgrid).T], axis=0).astype(np.float32)
    return bb, fb, fb.shape[0]


if __name__ == "__main__":
    # Small shapes consistent with the module's forward:
    # batch=2, features=3, channels=4 -> enc_in=12 (24 rows), input_size=16,
    # h=8, hidden=128 (lane-dense, tiles the MXU on all generations).
    b, features, channels, L, h, hidden = 2, 3, 4, 16, 8, 128

    key = jax.random.PRNGKey(0)
    kx, kp, kh = jax.random.split(key, 3)
    batch_x = jax.random.normal(kx, (b, features, channels, L), jnp.float32)

    # stack_types = ['identity', 'trend', 'seasonality'], n_blocks = [1, 1, 1]
    bases = [make_identity_basis(L, h),
             make_trend_basis(2, L, h),
             make_seasonality_basis(2, L, h)]
    blocks = []
    for pk, (bb, fb, split) in zip(jax.random.split(kp, len(bases)), bases):
        n_theta = bb.shape[0] + fb.shape[0]
        params = make_mlp_params(pk, L, hidden, n_theta)
        blocks.append((params, jnp.asarray(bb), jnp.asarray(fb), split))

    khw, khb = jax.random.split(kh)
    head_w = jax.random.normal(khw, (features,), jnp.float32) / np.sqrt(features)
    head_b = jax.random.normal(khb, (1,), jnp.float32) * 0.01

    packed = pack_blocks(blocks, L, h, hidden)
    wc, head_bias = make_head_operands(b, channels, features, head_w, head_b)

    fwd = jax.jit(nbeats_forward)
    out = jax.block_until_ready(fwd(batch_x, packed, wc, head_bias))

    # Tight check against a reference that mirrors the kernel's bf16 MXU operands,
    # and a looser sanity check against the pure-f32 PyTorch-equivalent math.
    ref_bf16 = nbeats_reference(batch_x, blocks, head_w, head_b,
                                features=features, h=h, matmul_dtype=jnp.bfloat16)
    ref_f32 = nbeats_reference(batch_x, blocks, head_w, head_b,
                               features=features, h=h, matmul_dtype=jnp.float32)
    np.testing.assert_allclose(np.asarray(out), np.asarray(ref_bf16),
                               rtol=2e-3, atol=2e-3)
    np.testing.assert_allclose(np.asarray(out), np.asarray(ref_f32),
                               rtol=5e-2, atol=5e-2)
    assert out.shape == (b, channels + 1)

    print("KERNEL_OK")
</pallas_src>

<mosaic_0001>
module attributes {stable_mosaic.version = 11 : i64} {
  func.func @_nbeats_fused_kernel(%arg0: i32, %arg1: memref<24x16xf32, #tpu.memory_space<vmem>>, %arg2: memref<3x24x128xbf16, #tpu.memory_space<vmem>>, %arg3: memref<3x1x128xf32, #tpu.memory_space<vmem>>, %arg4: memref<3x128x128xbf16, #tpu.memory_space<vmem>>, %arg5: memref<3x1x128xf32, #tpu.memory_space<vmem>>, %arg6: memref<3x128x128xbf16, #tpu.memory_space<vmem>>, %arg7: memref<3x1x128xf32, #tpu.memory_space<vmem>>, %arg8: memref<3x128x128xbf16, #tpu.memory_space<vmem>>, %arg9: memref<3x1x128xf32, #tpu.memory_space<vmem>>, %arg10: memref<3x128x32xbf16, #tpu.memory_space<vmem>>, %arg11: memref<3x1x32xf32, #tpu.memory_space<vmem>>, %arg12: memref<3x32x24xbf16, #tpu.memory_space<vmem>>, %arg13: memref<24x4xf32, #tpu.memory_space<vmem>>, %arg14: memref<1x1xf32, #tpu.memory_space<vmem>>, %arg15: memref<2x5xf32, #tpu.memory_space<vmem>>) attributes {dimension_semantics = [#tpu.dimension_semantics<arbitrary>], iteration_bounds = array<i64: 1>, scalar_prefetch = 0 : i64, scratch_operands = 0 : i64, tpu.core_type = #tpu.core_type<tc>, window_params = [{pipeline_mode = #tpu.pipeline_mode<synchronous>, transform_indices = @transform_0, window_bounds = array<i64: 24, 16>}, {pipeline_mode = #tpu.pipeline_mode<synchronous>, transform_indices = @transform_1, window_bounds = array<i64: 3, 24, 128>}, {pipeline_mode = #tpu.pipeline_mode<synchronous>, transform_indices = @transform_2, window_bounds = array<i64: 3, 1, 128>}, {pipeline_mode = #tpu.pipeline_mode<synchronous>, transform_indices = @transform_3, window_bounds = array<i64: 3, 128, 128>}, {pipeline_mode = #tpu.pipeline_mode<synchronous>, transform_indices = @transform_4, window_bounds = array<i64: 3, 1, 128>}, {pipeline_mode = #tpu.pipeline_mode<synchronous>, transform_indices = @transform_5, window_bounds = array<i64: 3, 128, 128>}, {pipeline_mode = #tpu.pipeline_mode<synchronous>, transform_indices = @transform_6, window_bounds = array<i64: 3, 1, 128>}, {pipeline_mode = #tpu.pipeline_mode<synchronous>, transform_indices = @transform_7, window_bounds = array<i64: 3, 128, 128>}, {pipeline_mode = #tpu.pipeline_mode<synchronous>, transform_indices = @transform_8, window_bounds = array<i64: 3, 1, 128>}, {pipeline_mode = #tpu.pipeline_mode<synchronous>, transform_indices = @transform_9, window_bounds = array<i64: 3, 128, 32>}, {pipeline_mode = #tpu.pipeline_mode<synchronous>, transform_indices = @transform_10, window_bounds = array<i64: 3, 1, 32>}, {pipeline_mode = #tpu.pipeline_mode<synchronous>, transform_indices = @transform_11, window_bounds = array<i64: 3, 32, 24>}, {pipeline_mode = #tpu.pipeline_mode<synchronous>, transform_indices = @transform_12, window_bounds = array<i64: 24, 4>}, {pipeline_mode = #tpu.pipeline_mode<synchronous>, transform_indices = @transform_13, window_bounds = array<i64: 1, 1>}, {pipeline_mode = #tpu.pipeline_mode<synchronous>, transform_indices = @transform_14, window_bounds = array<i64: 2, 5>}]} {
    %c0 = arith.constant 0 : index
    %c0_0 = arith.constant 0 : index
    %0 = vector.load %arg1[%c0, %c0_0] : memref<24x16xf32, #tpu.memory_space<vmem>>, vector<24x16xf32>
    %cst = arith.constant dense<0.000000e+00> : vector<24xf32>
    %1 = vector.multi_reduction <add>, %0, %cst [1] : vector<24x16xf32> to vector<24xf32>
    %2 = vector.shape_cast %1 : vector<24xf32> to vector<24x1xf32>
    %cst_1 = arith.constant 1.600000e+01 : f32
    %3 = vector.broadcast %cst_1 : f32 to vector<24x1xf32>
    %4 = arith.divf %2, %3 : vector<24x1xf32>
    %5 = vector.broadcast %4 : vector<24x1xf32> to vector<24x16xf32>
    %6 = arith.subf %0, %5 : vector<24x16xf32>
    %7 = arith.mulf %6, %6 : vector<24x16xf32>
    %cst_2 = arith.constant dense<0.000000e+00> : vector<24xf32>
    %8 = vector.multi_reduction <add>, %7, %cst_2 [1] : vector<24x16xf32> to vector<24xf32>
    %9 = vector.shape_cast %8 : vector<24xf32> to vector<24x1xf32>
    %cst_3 = arith.constant 1.600000e+01 : f32
    %10 = vector.broadcast %cst_3 : f32 to vector<24x1xf32>
    %11 = arith.divf %9, %10 : vector<24x1xf32>
    %12 = vector.broadcast %4 : vector<24x1xf32> to vector<24x16xf32>
    %13 = arith.subf %0, %12 : vector<24x16xf32>
    %cst_4 = arith.constant 9.99999974E-6 : f32
    %14 = vector.broadcast %cst_4 : f32 to vector<24x1xf32>
    %15 = arith.addf %11, %14 : vector<24x1xf32>
    %16 = math.rsqrt %15 : vector<24x1xf32>
    %17 = vector.broadcast %16 : vector<24x1xf32> to vector<24x16xf32>
    %18 = arith.mulf %13, %17 : vector<24x16xf32>
    %19 = vector.extract_strided_slice %18 {offsets = [0, 15], sizes = [24, 1], strides = [1, 1]} : vector<24x16xf32> to vector<24x1xf32>
    %20 = vector.shape_cast %19 : vector<24x1xf32> to vector<24x1xf32>
    %21 = vector.broadcast %20 : vector<24x1xf32> to vector<24x8xf32>
    %22 = tpu.concatenate %18, %21 in 1 : vector<24x16xf32>, vector<24x8xf32> -> vector<24x24xf32>
    %23 = arith.truncf %22 : vector<24x24xf32> to vector<24x24xbf16>
    %c0_5 = arith.constant 0 : index
    %c0_6 = arith.constant 0 : index
    %c0_7 = arith.constant 0 : index
    %24 = vector.load %arg2[%c0_5, %c0_6, %c0_7] : memref<3x24x128xbf16, #tpu.memory_space<vmem>>, vector<1x24x128xbf16>
    %25 = vector.shape_cast %24 : vector<1x24x128xbf16> to vector<24x128xbf16>
    %cst_8 = arith.constant dense<0.000000e+00> : vector<24x128xf32>
    %26 = tpu.matmul %23, %25, %cst_8 {dimension_numbers = #tpu.dot_dimension_numbers<[1], [0], [0], [1], [0, 0, 1, 1], [], []>} : vector<24x24xbf16>, vector<24x128xbf16>, vector<24x128xf32> -> vector<24x128xf32>
    %c0_9 = arith.constant 0 : index
    %c0_10 = arith.constant 0 : index
    %c0_11 = arith.constant 0 : index
    %27 = vector.load %arg3[%c0_9, %c0_10, %c0_11] : memref<3x1x128xf32, #tpu.memory_space<vmem>>, vector<1x1x128xf32>
    %28 = vector.shape_cast %27 : vector<1x1x128xf32> to vector<1x128xf32>
    %29 = vector.broadcast %28 : vector<1x128xf32> to vector<24x128xf32>
    %30 = arith.addf %26, %29 : vector<24x128xf32>
    %31 = arith.truncf %30 : vector<24x128xf32> to vector<24x128xbf16>
    %c0_12 = arith.constant 0 : index
    %c0_13 = arith.constant 0 : index
    %c0_14 = arith.constant 0 : index
    %32 = vector.load %arg4[%c0_12, %c0_13, %c0_14] : memref<3x128x128xbf16, #tpu.memory_space<vmem>>, vector<1x128x128xbf16>
    %33 = vector.shape_cast %32 : vector<1x128x128xbf16> to vector<128x128xbf16>
    %cst_15 = arith.constant dense<0.000000e+00> : vector<24x128xf32>
    %34 = tpu.matmul %31, %33, %cst_15 {dimension_numbers = #tpu.dot_dimension_numbers<[1], [0], [0], [1], [0, 0, 1, 1], [], []>} : vector<24x128xbf16>, vector<128x128xbf16>, vector<24x128xf32> -> vector<24x128xf32>
    %c0_16 = arith.constant 0 : index
    %c0_17 = arith.constant 0 : index
    %c0_18 = arith.constant 0 : index
    %35 = vector.load %arg5[%c0_16, %c0_17, %c0_18] : memref<3x1x128xf32, #tpu.memory_space<vmem>>, vector<1x1x128xf32>
    %36 = vector.shape_cast %35 : vector<1x1x128xf32> to vector<1x128xf32>
    %37 = vector.broadcast %36 : vector<1x128xf32> to vector<24x128xf32>
    %38 = arith.addf %34, %37 : vector<24x128xf32>
    %cst_19 = arith.constant 0.000000e+00 : f32
    %39 = vector.broadcast %cst_19 : f32 to vector<24x128xf32>
    %40 = arith.maximumf %38, %39 : vector<24x128xf32>
    %41 = arith.truncf %40 : vector<24x128xf32> to vector<24x128xbf16>
    %c0_20 = arith.constant 0 : index
    %c0_21 = arith.constant 0 : index
    %c0_22 = arith.constant 0 : index
    %42 = vector.load %arg6[%c0_20, %c0_21, %c0_22] : memref<3x128x128xbf16, #tpu.memory_space<vmem>>, vector<1x128x128xbf16>
    %43 = vector.shape_cast %42 : vector<1x128x128xbf16> to vector<128x128xbf16>
    %cst_23 = arith.constant dense<0.000000e+00> : vector<24x128xf32>
    %44 = tpu.matmul %41, %43, %cst_23 {dimension_numbers = #tpu.dot_dimension_numbers<[1], [0], [0], [1], [0, 0, 1, 1], [], []>} : vector<24x128xbf16>, vector<128x128xbf16>, vector<24x128xf32> -> vector<24x128xf32>
    %c0_24 = arith.constant 0 : index
    %c0_25 = arith.constant 0 : index
    %c0_26 = arith.constant 0 : index
    %45 = vector.load %arg7[%c0_24, %c0_25, %c0_26] : memref<3x1x128xf32, #tpu.memory_space<vmem>>, vector<1x1x128xf32>
    %46 = vector.shape_cast %45 : vector<1x1x128xf32> to vector<1x128xf32>
    %47 = vector.broadcast %46 : vector<1x128xf32> to vector<24x128xf32>
    %48 = arith.addf %44, %47 : vector<24x128xf32>
    %cst_27 = arith.constant 0.000000e+00 : f32
    %49 = vector.broadcast %cst_27 : f32 to vector<24x128xf32>
    %50 = arith.maximumf %48, %49 : vector<24x128xf32>
    %51 = arith.truncf %50 : vector<24x128xf32> to vector<24x128xbf16>
    %c0_28 = arith.constant 0 : index
    %c0_29 = arith.constant 0 : index
    %c0_30 = arith.constant 0 : index
    %52 = vector.load %arg8[%c0_28, %c0_29, %c0_30] : memref<3x128x128xbf16, #tpu.memory_space<vmem>>, vector<1x128x128xbf16>
    %53 = vector.shape_cast %52 : vector<1x128x128xbf16> to vector<128x128xbf16>
    %cst_31 = arith.constant dense<0.000000e+00> : vector<24x128xf32>
    %54 = tpu.matmul %51, %53, %cst_31 {dimension_numbers = #tpu.dot_dimension_numbers<[1], [0], [0], [1], [0, 0, 1, 1], [], []>} : vector<24x128xbf16>, vector<128x128xbf16>, vector<24x128xf32> -> vector<24x128xf32>
    %c0_32 = arith.constant 0 : index
    %c0_33 = arith.constant 0 : index
    %c0_34 = arith.constant 0 : index
    %55 = vector.load %arg9[%c0_32, %c0_33, %c0_34] : memref<3x1x128xf32, #tpu.memory_space<vmem>>, vector<1x1x128xf32>
    %56 = vector.shape_cast %55 : vector<1x1x128xf32> to vector<1x128xf32>
    %57 = vector.broadcast %56 : vector<1x128xf32> to vector<24x128xf32>
    %58 = arith.addf %54, %57 : vector<24x128xf32>
    %cst_35 = arith.constant 0.000000e+00 : f32
    %59 = vector.broadcast %cst_35 : f32 to vector<24x128xf32>
    %60 = arith.maximumf %58, %59 : vector<24x128xf32>
    %61 = arith.truncf %60 : vector<24x128xf32> to vector<24x128xbf16>
    %c0_36 = arith.constant 0 : index
    %c0_37 = arith.constant 0 : index
    %c0_38 = arith.constant 0 : index
    %62 = vector.load %arg10[%c0_36, %c0_37, %c0_38] : memref<3x128x32xbf16, #tpu.memory_space<vmem>>, vector<1x128x32xbf16>
    %63 = vector.shape_cast %62 : vector<1x128x32xbf16> to vector<128x32xbf16>
    %cst_39 = arith.constant dense<0.000000e+00> : vector<24x32xf32>
    %64 = tpu.matmul %61, %63, %cst_39 {dimension_numbers = #tpu.dot_dimension_numbers<[1], [0], [0], [1], [0, 0, 1, 1], [], []>} : vector<24x128xbf16>, vector<128x32xbf16>, vector<24x32xf32> -> vector<24x32xf32>
    %c0_40 = arith.constant 0 : index
    %c0_41 = arith.constant 0 : index
    %c0_42 = arith.constant 0 : index
    %65 = vector.load %arg11[%c0_40, %c0_41, %c0_42] : memref<3x1x32xf32, #tpu.memory_space<vmem>>, vector<1x1x32xf32>
    %66 = vector.shape_cast %65 : vector<1x1x32xf32> to vector<1x32xf32>
    %67 = vector.broadcast %66 : vector<1x32xf32> to vector<24x32xf32>
    %68 = arith.addf %64, %67 : vector<24x32xf32>
    %69 = arith.truncf %68 : vector<24x32xf32> to vector<24x32xbf16>
    %c0_43 = arith.constant 0 : index
    %c0_44 = arith.constant 0 : index
    %c0_45 = arith.constant 0 : index
    %70 = vector.load %arg12[%c0_43, %c0_44, %c0_45] : memref<3x32x24xbf16, #tpu.memory_space<vmem>>, vector<1x32x24xbf16>
    %71 = vector.shape_cast %70 : vector<1x32x24xbf16> to vector<32x24xbf16>
    %cst_46 = arith.constant dense<0.000000e+00> : vector<24x24xf32>
    %72 = tpu.matmul %69, %71, %cst_46 {dimension_numbers = #tpu.dot_dimension_numbers<[1], [0], [0], [1], [0, 0, 1, 1], [], []>} : vector<24x32xbf16>, vector<32x24xbf16>, vector<24x24xf32> -> vector<24x24xf32>
    %73 = arith.addf %22, %72 : vector<24x24xf32>
    %74 = arith.truncf %73 : vector<24x24xf32> to vector<24x24xbf16>
    %c1 = arith.constant 1 : index
    %c0_47 = arith.constant 0 : index
    %c0_48 = arith.constant 0 : index
    %75 = vector.load %arg2[%c1, %c0_47, %c0_48] : memref<3x24x128xbf16, #tpu.memory_space<vmem>>, vector<1x24x128xbf16>
    %76 = vector.shape_cast %75 : vector<1x24x128xbf16> to vector<24x128xbf16>
    %cst_49 = arith.constant dense<0.000000e+00> : vector<24x128xf32>
    %77 = tpu.matmul %74, %76, %cst_49 {dimension_numbers = #tpu.dot_dimension_numbers<[1], [0], [0], [1], [0, 0, 1, 1], [], []>} : vector<24x24xbf16>, vector<24x128xbf16>, vector<24x128xf32> -> vector<24x128xf32>
    %c1_50 = arith.constant 1 : index
    %c0_51 = arith.constant 0 : index
    %c0_52 = arith.constant 0 : index
    %78 = vector.load %arg3[%c1_50, %c0_51, %c0_52] : memref<3x1x128xf32, #tpu.memory_space<vmem>>, vector<1x1x128xf32>
    %79 = vector.shape_cast %78 : vector<1x1x128xf32> to vector<1x128xf32>
    %80 = vector.broadcast %79 : vector<1x128xf32> to vector<24x128xf32>
    %81 = arith.addf %77, %80 : vector<24x128xf32>
    %82 = arith.truncf %81 : vector<24x128xf32> to vector<24x128xbf16>
    %c1_53 = arith.constant 1 : index
    %c0_54 = arith.constant 0 : index
    %c0_55 = arith.constant 0 : index
    %83 = vector.load %arg4[%c1_53, %c0_54, %c0_55] : memref<3x128x128xbf16, #tpu.memory_space<vmem>>, vector<1x128x128xbf16>
    %84 = vector.shape_cast %83 : vector<1x128x128xbf16> to vector<128x128xbf16>
    %cst_56 = arith.constant dense<0.000000e+00> : vector<24x128xf32>
    %85 = tpu.matmul %82, %84, %cst_56 {dimension_numbers = #tpu.dot_dimension_numbers<[1], [0], [0], [1], [0, 0, 1, 1], [], []>} : vector<24x128xbf16>, vector<128x128xbf16>, vector<24x128xf32> -> vector<24x128xf32>
    %c1_57 = arith.constant 1 : index
    %c0_58 = arith.constant 0 : index
    %c0_59 = arith.constant 0 : index
    %86 = vector.load %arg5[%c1_57, %c0_58, %c0_59] : memref<3x1x128xf32, #tpu.memory_space<vmem>>, vector<1x1x128xf32>
    %87 = vector.shape_cast %86 : vector<1x1x128xf32> to vector<1x128xf32>
    %88 = vector.broadcast %87 : vector<1x128xf32> to vector<24x128xf32>
    %89 = arith.addf %85, %88 : vector<24x128xf32>
    %cst_60 = arith.constant 0.000000e+00 : f32
    %90 = vector.broadcast %cst_60 : f32 to vector<24x128xf32>
    %91 = arith.maximumf %89, %90 : vector<24x128xf32>
    %92 = arith.truncf %91 : vector<24x128xf32> to vector<24x128xbf16>
    %c1_61 = arith.constant 1 : index
    %c0_62 = arith.constant 0 : index
    %c0_63 = arith.constant 0 : index
    %93 = vector.load %arg6[%c1_61, %c0_62, %c0_63] : memref<3x128x128xbf16, #tpu.memory_space<vmem>>, vector<1x128x128xbf16>
    %94 = vector.shape_cast %93 : vector<1x128x128xbf16> to vector<128x128xbf16>
    %cst_64 = arith.constant dense<0.000000e+00> : vector<24x128xf32>
    %95 = tpu.matmul %92, %94, %cst_64 {dimension_numbers = #tpu.dot_dimension_numbers<[1], [0], [0], [1], [0, 0, 1, 1], [], []>} : vector<24x128xbf16>, vector<128x128xbf16>, vector<24x128xf32> -> vector<24x128xf32>
    %c1_65 = arith.constant 1 : index
    %c0_66 = arith.constant 0 : index
    %c0_67 = arith.constant 0 : index
    %96 = vector.load %arg7[%c1_65, %c0_66, %c0_67] : memref<3x1x128xf32, #tpu.memory_space<vmem>>, vector<1x1x128xf32>
    %97 = vector.shape_cast %96 : vector<1x1x128xf32> to vector<1x128xf32>
    %98 = vector.broadcast %97 : vector<1x128xf32> to vector<24x128xf32>
    %99 = arith.addf %95, %98 : vector<24x128xf32>
    %cst_68 = arith.constant 0.000000e+00 : f32
    %100 = vector.broadcast %cst_68 : f32 to vector<24x128xf32>
    %101 = arith.maximumf %99, %100 : vector<24x128xf32>
    %102 = arith.truncf %101 : vector<24x128xf32> to vector<24x128xbf16>
    %c1_69 = arith.constant 1 : index
    %c0_70 = arith.constant 0 : index
    %c0_71 = arith.constant 0 : index
    %103 = vector.load %arg8[%c1_69, %c0_70, %c0_71] : memref<3x128x128xbf16, #tpu.memory_space<vmem>>, vector<1x128x128xbf16>
    %104 = vector.shape_cast %103 : vector<1x128x128xbf16> to vector<128x128xbf16>
    %cst_72 = arith.constant dense<0.000000e+00> : vector<24x128xf32>
    %105 = tpu.matmul %102, %104, %cst_72 {dimension_numbers = #tpu.dot_dimension_numbers<[1], [0], [0], [1], [0, 0, 1, 1], [], []>} : vector<24x128xbf16>, vector<128x128xbf16>, vector<24x128xf32> -> vector<24x128xf32>
    %c1_73 = arith.constant 1 : index
    %c0_74 = arith.constant 0 : index
    %c0_75 = arith.constant 0 : index
    %106 = vector.load %arg9[%c1_73, %c0_74, %c0_75] : memref<3x1x128xf32, #tpu.memory_space<vmem>>, vector<1x1x128xf32>
    %107 = vector.shape_cast %106 : vector<1x1x128xf32> to vector<1x128xf32>
    %108 = vector.broadcast %107 : vector<1x128xf32> to vector<24x128xf32>
    %109 = arith.addf %105, %108 : vector<24x128xf32>
    %cst_76 = arith.constant 0.000000e+00 : f32
    %110 = vector.broadcast %cst_76 : f32 to vector<24x128xf32>
    %111 = arith.maximumf %109, %110 : vector<24x128xf32>
    %112 = arith.truncf %111 : vector<24x128xf32> to vector<24x128xbf16>
    %c1_77 = arith.constant 1 : index
    %c0_78 = arith.constant 0 : index
    %c0_79 = arith.constant 0 : index
    %113 = vector.load %arg10[%c1_77, %c0_78, %c0_79] : memref<3x128x32xbf16, #tpu.memory_space<vmem>>, vector<1x128x32xbf16>
    %114 = vector.shape_cast %113 : vector<1x128x32xbf16> to vector<128x32xbf16>
    %cst_80 = arith.constant dense<0.000000e+00> : vector<24x32xf32>
    %115 = tpu.matmul %112, %114, %cst_80 {dimension_numbers = #tpu.dot_dimension_numbers<[1], [0], [0], [1], [0, 0, 1, 1], [], []>} : vector<24x128xbf16>, vector<128x32xbf16>, vector<24x32xf32> -> vector<24x32xf32>
    %c1_81 = arith.constant 1 : index
    %c0_82 = arith.constant 0 : index
    %c0_83 = arith.constant 0 : index
    %116 = vector.load %arg11[%c1_81, %c0_82, %c0_83] : memref<3x1x32xf32, #tpu.memory_space<vmem>>, vector<1x1x32xf32>
    %117 = vector.shape_cast %116 : vector<1x1x32xf32> to vector<1x32xf32>
    %118 = vector.broadcast %117 : vector<1x32xf32> to vector<24x32xf32>
    %119 = arith.addf %115, %118 : vector<24x32xf32>
    %120 = arith.truncf %119 : vector<24x32xf32> to vector<24x32xbf16>
    %c1_84 = arith.constant 1 : index
    %c0_85 = arith.constant 0 : index
    %c0_86 = arith.constant 0 : index
    %121 = vector.load %arg12[%c1_84, %c0_85, %c0_86] : memref<3x32x24xbf16, #tpu.memory_space<vmem>>, vector<1x32x24xbf16>
    %122 = vector.shape_cast %121 : vector<1x32x24xbf16> to vector<32x24xbf16>
    %cst_87 = arith.constant dense<0.000000e+00> : vector<24x24xf32>
    %123 = tpu.matmul %120, %122, %cst_87 {dimension_numbers = #tpu.dot_dimension_numbers<[1], [0], [0], [1], [0, 0, 1, 1], [], []>} : vector<24x32xbf16>, vector<32x24xbf16>, vector<24x24xf32> -> vector<24x24xf32>
    %124 = arith.addf %73, %123 : vector<24x24xf32>
    %125 = arith.truncf %124 : vector<24x24xf32> to vector<24x24xbf16>
    %c2 = arith.constant 2 : index
    %c0_88 = arith.constant 0 : index
    %c0_89 = arith.constant 0 : index
    %126 = vector.load %arg2[%c2, %c0_88, %c0_89] : memref<3x24x128xbf16, #tpu.memory_space<vmem>>, vector<1x24x128xbf16>
    %127 = vector.shape_cast %126 : vector<1x24x128xbf16> to vector<24x128xbf16>
    %cst_90 = arith.constant dense<0.000000e+00> : vector<24x128xf32>
    %128 = tpu.matmul %125, %127, %cst_90 {dimension_numbers = #tpu.dot_dimension_numbers<[1], [0], [0], [1], [0, 0, 1, 1], [], []>} : vector<24x24xbf16>, vector<24x128xbf16>, vector<24x128xf32> -> vector<24x128xf32>
    %c2_91 = arith.constant 2 : index
    %c0_92 = arith.constant 0 : index
    %c0_93 = arith.constant 0 : index
    %129 = vector.load %arg3[%c2_91, %c0_92, %c0_93] : memref<3x1x128xf32, #tpu.memory_space<vmem>>, vector<1x1x128xf32>
    %130 = vector.shape_cast %129 : vector<1x1x128xf32> to vector<1x128xf32>
    %131 = vector.broadcast %130 : vector<1x128xf32> to vector<24x128xf32>
    %132 = arith.addf %128, %131 : vector<24x128xf32>
    %133 = arith.truncf %132 : vector<24x128xf32> to vector<24x128xbf16>
    %c2_94 = arith.constant 2 : index
    %c0_95 = arith.constant 0 : index
    %c0_96 = arith.constant 0 : index
    %134 = vector.load %arg4[%c2_94, %c0_95, %c0_96] : memref<3x128x128xbf16, #tpu.memory_space<vmem>>, vector<1x128x128xbf16>
    %135 = vector.shape_cast %134 : vector<1x128x128xbf16> to vector<128x128xbf16>
    %cst_97 = arith.constant dense<0.000000e+00> : vector<24x128xf32>
    %136 = tpu.matmul %133, %135, %cst_97 {dimension_numbers = #tpu.dot_dimension_numbers<[1], [0], [0], [1], [0, 0, 1, 1], [], []>} : vector<24x128xbf16>, vector<128x128xbf16>, vector<24x128xf32> -> vector<24x128xf32>
    %c2_98 = arith.constant 2 : index
    %c0_99 = arith.constant 0 : index
    %c0_100 = arith.constant 0 : index
    %137 = vector.load %arg5[%c2_98, %c0_99, %c0_100] : memref<3x1x128xf32, #tpu.memory_space<vmem>>, vector<1x1x128xf32>
    %138 = vector.shape_cast %137 : vector<1x1x128xf32> to vector<1x128xf32>
    %139 = vector.broadcast %138 : vector<1x128xf32> to vector<24x128xf32>
    %140 = arith.addf %136, %139 : vector<24x128xf32>
    %cst_101 = arith.constant 0.000000e+00 : f32
    %141 = vector.broadcast %cst_101 : f32 to vector<24x128xf32>
    %142 = arith.maximumf %140, %141 : vector<24x128xf32>
    %143 = arith.truncf %142 : vector<24x128xf32> to vector<24x128xbf16>
    %c2_102 = arith.constant 2 : index
    %c0_103 = arith.constant 0 : index
    %c0_104 = arith.constant 0 : index
    %144 = vector.load %arg6[%c2_102, %c0_103, %c0_104] : memref<3x128x128xbf16, #tpu.memory_space<vmem>>, vector<1x128x128xbf16>
    %145 = vector.shape_cast %144 : vector<1x128x128xbf16> to vector<128x128xbf16>
    %cst_105 = arith.constant dense<0.000000e+00> : vector<24x128xf32>
    %146 = tpu.matmul %143, %145, %cst_105 {dimension_numbers = #tpu.dot_dimension_numbers<[1], [0], [0], [1], [0, 0, 1, 1], [], []>} : vector<24x128xbf16>, vector<128x128xbf16>, vector<24x128xf32> -> vector<24x128xf32>
    %c2_106 = arith.constant 2 : index
    %c0_107 = arith.constant 0 : index
    %c0_108 = arith.constant 0 : index
    %147 = vector.load %arg7[%c2_106, %c0_107, %c0_108] : memref<3x1x128xf32, #tpu.memory_space<vmem>>, vector<1x1x128xf32>
    %148 = vector.shape_cast %147 : vector<1x1x128xf32> to vector<1x128xf32>
    %149 = vector.broadcast %148 : vector<1x128xf32> to vector<24x128xf32>
    %150 = arith.addf %146, %149 : vector<24x128xf32>
    %cst_109 = arith.constant 0.000000e+00 : f32
    %151 = vector.broadcast %cst_109 : f32 to vector<24x128xf32>
    %152 = arith.maximumf %150, %151 : vector<24x128xf32>
    %153 = arith.truncf %152 : vector<24x128xf32> to vector<24x128xbf16>
    %c2_110 = arith.constant 2 : index
    %c0_111 = arith.constant 0 : index
    %c0_112 = arith.constant 0 : index
    %154 = vector.load %arg8[%c2_110, %c0_111, %c0_112] : memref<3x128x128xbf16, #tpu.memory_space<vmem>>, vector<1x128x128xbf16>
    %155 = vector.shape_cast %154 : vector<1x128x128xbf16> to vector<128x128xbf16>
    %cst_113 = arith.constant dense<0.000000e+00> : vector<24x128xf32>
    %156 = tpu.matmul %153, %155, %cst_113 {dimension_numbers = #tpu.dot_dimension_numbers<[1], [0], [0], [1], [0, 0, 1, 1], [], []>} : vector<24x128xbf16>, vector<128x128xbf16>, vector<24x128xf32> -> vector<24x128xf32>
    %c2_114 = arith.constant 2 : index
    %c0_115 = arith.constant 0 : index
    %c0_116 = arith.constant 0 : index
    %157 = vector.load %arg9[%c2_114, %c0_115, %c0_116] : memref<3x1x128xf32, #tpu.memory_space<vmem>>, vector<1x1x128xf32>
    %158 = vector.shape_cast %157 : vector<1x1x128xf32> to vector<1x128xf32>
    %159 = vector.broadcast %158 : vector<1x128xf32> to vector<24x128xf32>
    %160 = arith.addf %156, %159 : vector<24x128xf32>
    %cst_117 = arith.constant 0.000000e+00 : f32
    %161 = vector.broadcast %cst_117 : f32 to vector<24x128xf32>
    %162 = arith.maximumf %160, %161 : vector<24x128xf32>
    %163 = arith.truncf %162 : vector<24x128xf32> to vector<24x128xbf16>
    %c2_118 = arith.constant 2 : index
    %c0_119 = arith.constant 0 : index
    %c0_120 = arith.constant 0 : index
    %164 = vector.load %arg10[%c2_118, %c0_119, %c0_120] : memref<3x128x32xbf16, #tpu.memory_space<vmem>>, vector<1x128x32xbf16>
    %165 = vector.shape_cast %164 : vector<1x128x32xbf16> to vector<128x32xbf16>
    %cst_121 = arith.constant dense<0.000000e+00> : vector<24x32xf32>
    %166 = tpu.matmul %163, %165, %cst_121 {dimension_numbers = #tpu.dot_dimension_numbers<[1], [0], [0], [1], [0, 0, 1, 1], [], []>} : vector<24x128xbf16>, vector<128x32xbf16>, vector<24x32xf32> -> vector<24x32xf32>
    %c2_122 = arith.constant 2 : index
    %c0_123 = arith.constant 0 : index
    %c0_124 = arith.constant 0 : index
    %167 = vector.load %arg11[%c2_122, %c0_123, %c0_124] : memref<3x1x32xf32, #tpu.memory_space<vmem>>, vector<1x1x32xf32>
    %168 = vector.shape_cast %167 : vector<1x1x32xf32> to vector<1x32xf32>
    %169 = vector.broadcast %168 : vector<1x32xf32> to vector<24x32xf32>
    %170 = arith.addf %166, %169 : vector<24x32xf32>
    %171 = arith.truncf %170 : vector<24x32xf32> to vector<24x32xbf16>
    %c2_125 = arith.constant 2 : index
    %c0_126 = arith.constant 0 : index
    %c0_127 = arith.constant 0 : index
    %172 = vector.load %arg12[%c2_125, %c0_126, %c0_127] : memref<3x32x24xbf16, #tpu.memory_space<vmem>>, vector<1x32x24xbf16>
    %173 = vector.shape_cast %172 : vector<1x32x24xbf16> to vector<32x24xbf16>
    %cst_128 = arith.constant dense<0.000000e+00> : vector<24x24xf32>
    %174 = tpu.matmul %171, %173, %cst_128 {dimension_numbers = #tpu.dot_dimension_numbers<[1], [0], [0], [1], [0, 0, 1, 1], [], []>} : vector<24x32xbf16>, vector<32x24xbf16>, vector<24x24xf32> -> vector<24x24xf32>
    %175 = arith.addf %124, %174 : vector<24x24xf32>
    %176 = vector.extract_strided_slice %175 {offsets = [0, 16], sizes = [24, 1], strides = [1, 1]} : vector<24x24xf32> to vector<24x1xf32>
    %c0_129 = arith.constant 0 : index
    %c0_130 = arith.constant 0 : index
    %177 = vector.load %arg13[%c0_129, %c0_130] : memref<24x4xf32, #tpu.memory_space<vmem>>, vector<24x4xf32>
    %178 = vector.broadcast %176 : vector<24x1xf32> to vector<24x4xf32>
    %179 = arith.mulf %178, %177 : vector<24x4xf32>
    %180 = vector.extract_strided_slice %179 {offsets = [0, 0], sizes = [12, 4], strides = [1, 1]} : vector<24x4xf32> to vector<12x4xf32>
    %cst_131 = arith.constant dense<0.000000e+00> : vector<4xf32>
    %181 = vector.multi_reduction <add>, %180, %cst_131 [0] : vector<12x4xf32> to vector<4xf32>
    %182 = vector.shape_cast %181 : vector<4xf32> to vector<1x4xf32>
    %183 = vector.extract_strided_slice %179 {offsets = [12, 0], sizes = [12, 4], strides = [1, 1]} : vector<24x4xf32> to vector<12x4xf32>
    %cst_132 = arith.constant dense<0.000000e+00> : vector<4xf32>
    %184 = vector.multi_reduction <add>, %183, %cst_132 [0] : vector<12x4xf32> to vector<4xf32>
    %185 = vector.shape_cast %184 : vector<4xf32> to vector<1x4xf32>
    %186 = tpu.concatenate %182, %185 in 0 : vector<1x4xf32>, vector<1x4xf32> -> vector<2x4xf32>
    %c0_133 = arith.constant 0 : index
    %c0_134 = arith.constant 0 : index
    %187 = vector.load %arg14[%c0_133, %c0_134] : memref<1x1xf32, #tpu.memory_space<vmem>>, vector<1x1xf32>
    %188 = vector.broadcast %187 : vector<1x1xf32> to vector<2x4xf32>
    %189 = arith.addf %186, %188 : vector<2x4xf32>
    %cst_135 = arith.constant 0.000000e+00 : f32
    %190 = vector.broadcast %cst_135 : f32 to vector<2x4xf32>
    %191 = arith.maximumf %189, %190 : vector<2x4xf32>
    %cst_136 = arith.constant dense<0xFF800000> : vector<2xf32>
    %192 = vector.multi_reduction <maximumf>, %191, %cst_136 [1] : vector<2x4xf32> to vector<2xf32>
    %193 = vector.shape_cast %192 : vector<2xf32> to vector<2x1xf32>
    %194 = vector.broadcast %193 : vector<2x1xf32> to vector<2x4xf32>
    %195 = arith.subf %191, %194 : vector<2x4xf32>
    %196 = math.exp %195 : vector<2x4xf32>
    %cst_137 = arith.constant dense<0.000000e+00> : vector<2xf32>
    %197 = vector.multi_reduction <add>, %196, %cst_137 [1] : vector<2x4xf32> to vector<2xf32>
    %198 = vector.shape_cast %197 : vector<2xf32> to vector<2x1xf32>
    %199 = vector.broadcast %198 : vector<2x1xf32> to vector<2x4xf32>
    %200 = arith.divf %196, %199 : vector<2x4xf32>
    %cst_138 = arith.constant 0.000000e+00 : f32
    %201 = vector.broadcast %cst_138 : f32 to vector<2x1xf32>
    %202 = tpu.concatenate %201, %200 in 1 : vector<2x1xf32>, vector<2x4xf32> -> vector<2x5xf32>
    %c0_139 = arith.constant 0 : index
    %c0_140 = arith.constant 0 : index
    %203 = vector.load %arg15[%c0_139, %c0_140] : memref<2x5xf32, #tpu.memory_space<vmem>>, vector<2x5xf32>
    tpu.vector_store %arg15[%c0_139, %c0_140], %202 {strides = array<i32>} : memref<2x5xf32, #tpu.memory_space<vmem>>, vector<2x5xf32>,
    return
  }
  func.func @transform_0(%arg0: i32) -> (i32, i32) {
    %c0_i32 = arith.constant 0 : i32
    %c0_i32_0 = arith.constant 0 : i32
    %c0_i32_1 = arith.constant 0 : i32
    return %c0_i32, %c0_i32_0 : i32, i32
  }
  func.func @transform_1(%arg0: i32) -> (i32, i32, i32) {
    %c0_i32 = arith.constant 0 : i32
    %c0_i32_0 = arith.constant 0 : i32
    %c0_i32_1 = arith.constant 0 : i32
    %c0_i32_2 = arith.constant 0 : i32
    return %c0_i32, %c0_i32_0, %c0_i32_1 : i32, i32, i32
  }
  func.func @transform_2(%arg0: i32) -> (i32, i32, i32) {
    %c0_i32 = arith.constant 0 : i32
    %c0_i32_0 = arith.constant 0 : i32
    %c0_i32_1 = arith.constant 0 : i32
    %c0_i32_2 = arith.constant 0 : i32
    return %c0_i32, %c0_i32_0, %c0_i32_1 : i32, i32, i32
  }
  func.func @transform_3(%arg0: i32) -> (i32, i32, i32) {
    %c0_i32 = arith.constant 0 : i32
    %c0_i32_0 = arith.constant 0 : i32
    %c0_i32_1 = arith.constant 0 : i32
    %c0_i32_2 = arith.constant 0 : i32
    return %c0_i32, %c0_i32_0, %c0_i32_1 : i32, i32, i32
  }
  func.func @transform_4(%arg0: i32) -> (i32, i32, i32) {
    %c0_i32 = arith.constant 0 : i32
    %c0_i32_0 = arith.constant 0 : i32
    %c0_i32_1 = arith.constant 0 : i32
    %c0_i32_2 = arith.constant 0 : i32
    return %c0_i32, %c0_i32_0, %c0_i32_1 : i32, i32, i32
  }
  func.func @transform_5(%arg0: i32) -> (i32, i32, i32) {
    %c0_i32 = arith.constant 0 : i32
    %c0_i32_0 = arith.constant 0 : i32
    %c0_i32_1 = arith.constant 0 : i32
    %c0_i32_2 = arith.constant 0 : i32
    return %c0_i32, %c0_i32_0, %c0_i32_1 : i32, i32, i32
  }
  func.func @transform_6(%arg0: i32) -> (i32, i32, i32) {
    %c0_i32 = arith.constant 0 : i32
    %c0_i32_0 = arith.constant 0 : i32
    %c0_i32_1 = arith.constant 0 : i32
    %c0_i32_2 = arith.constant 0 : i32
    return %c0_i32, %c0_i32_0, %c0_i32_1 : i32, i32, i32
  }
  func.func @transform_7(%arg0: i32) -> (i32, i32, i32) {
    %c0_i32 = arith.constant 0 : i32
    %c0_i32_0 = arith.constant 0 : i32
    %c0_i32_1 = arith.constant 0 : i32
    %c0_i32_2 = arith.constant 0 : i32
    return %c0_i32, %c0_i32_0, %c0_i32_1 : i32, i32, i32
  }
  func.func @transform_8(%arg0: i32) -> (i32, i32, i32) {
    %c0_i32 = arith.constant 0 : i32
    %c0_i32_0 = arith.constant 0 : i32
    %c0_i32_1 = arith.constant 0 : i32
    %c0_i32_2 = arith.constant 0 : i32
    return %c0_i32, %c0_i32_0, %c0_i32_1 : i32, i32, i32
  }
  func.func @transform_9(%arg0: i32) -> (i32, i32, i32) {
    %c0_i32 = arith.constant 0 : i32
    %c0_i32_0 = arith.constant 0 : i32
    %c0_i32_1 = arith.constant 0 : i32
    %c0_i32_2 = arith.constant 0 : i32
    return %c0_i32, %c0_i32_0, %c0_i32_1 : i32, i32, i32
  }
  func.func @transform_10(%arg0: i32) -> (i32, i32, i32) {
    %c0_i32 = arith.constant 0 : i32
    %c0_i32_0 = arith.constant 0 : i32
    %c0_i32_1 = arith.constant 0 : i32
    %c0_i32_2 = arith.constant 0 : i32
    return %c0_i32, %c0_i32_0, %c0_i32_1 : i32, i32, i32
  }
  func.func @transform_11(%arg0: i32) -> (i32, i32, i32) {
    %c0_i32 = arith.constant 0 : i32
    %c0_i32_0 = arith.constant 0 : i32
    %c0_i32_1 = arith.constant 0 : i32
    %c0_i32_2 = arith.constant 0 : i32
    return %c0_i32, %c0_i32_0, %c0_i32_1 : i32, i32, i32
  }
  func.func @transform_12(%arg0: i32) -> (i32, i32) {
    %c0_i32 = arith.constant 0 : i32
    %c0_i32_0 = arith.constant 0 : i32
    %c0_i32_1 = arith.constant 0 : i32
    return %c0_i32, %c0_i32_0 : i32, i32
  }
  func.func @transform_13(%arg0: i32) -> (i32, i32) {
    %c0_i32 = arith.constant 0 : i32
    %c0_i32_0 = arith.constant 0 : i32
    %c0_i32_1 = arith.constant 0 : i32
    return %c0_i32, %c0_i32_0 : i32, i32
  }
  func.func @transform_14(%arg0: i32) -> (i32, i32) {
    %c0_i32 = arith.constant 0 : i32
    %c0_i32_0 = arith.constant 0 : i32
    %c0_i32_1 = arith.constant 0 : i32
    return %c0_i32, %c0_i32_0 : i32, i32
  }
}

</mosaic_0001>

<bundles_post_ra>
// kernel: nbeats_forward.1
= control target key start
LH: loop header
LB: loop body
LE: loop exit
PB: predicated region body
PF: predicated region fallthrough
CT: control target
= control target key end

     0   :  { %s3792_s0 = inlined_call_operand.vmem [shape: f32[24,16], index: 0, kind: input, shape index: {}]   ;;  %s3793_s1 = inlined_call_operand.vmem [shape: bf16[3,24,128], index: 1, kind: input, shape index: {}]   ;;  %s3794_s2 = inlined_call_operand.hbm [shape: f32[3,1,128], index: 2, kind: input, shape index: {}]   ;;  %s3795_s3 = inlined_call_operand.vmem [shape: bf16[3,128,128], index: 3, kind: input, shape index: {}]   ;;  %s3796_s4 = inlined_call_operand.hbm [shape: f32[3,1,128], index: 4, kind: input, shape index: {}]   ;;  %s3797_s5 = inlined_call_operand.vmem [shape: bf16[3,128,128], index: 5, kind: input, shape index: {}]   ;;  %s3798_s6 = inlined_call_operand.hbm [shape: f32[3,1,128], index: 6, kind: input, shape index: {}]   ;;  %s3799_s7 = inlined_call_operand.hbm [shape: bf16[3,128,128], index: 7, kind: input, shape index: {}]   ;;  %s3800_s8 = inlined_call_operand.hbm [shape: f32[3,1,128], index: 8, kind: input, shape index: {}]   ;;  %s3801_s9 = inlined_call_operand.vmem [shape: bf16[3,128,32], index: 9, kind: input, shape index: {}]   ;;  %s3802_s10 = inlined_call_operand.hbm [shape: f32[3,1,32], index: 10, kind: input, shape index: {}]   ;;  %s3803_s11 = inlined_call_operand.vmem [shape: bf16[3,32,24], index: 11, kind: input, shape index: {}]   ;;  %s3804_s12 = inlined_call_operand.vmem [shape: f32[24,4], index: 12, kind: input, shape index: {}]   ;;  %s3805_s13 = inlined_call_operand.<no memory space> [shape: f32[1,1], index: 13, kind: input, shape index: {}]   ;;  %s3806_s14 = inlined_call_operand.hbm [shape: f32[2,5], index: 14, kind: output, shape index: {}]  }
   0x1   :  { %v19_v0 = vstv %s3805_s13 }
   0x2   :  { %20 = vst [vmem:[#allocation2] sm:$0x1] %v19_v0 }
   0x3   :  { %21 = vsyncpa [#allocation4], 0 }
   0x4   :  { %22 = vsyncpa [#allocation7], 0 }
   0x5   :  { %23 = vsyncpa [#allocation10], 0 }
   0x6   :  { %24 = vsyncpa [#allocation13], 0 }
   0x7   :  { %25 = vsyncpa [#allocation5], 0  ;;  %s3240_s15 = smov [#allocation6]   ;;  %s3241_s17 = smov [#allocation9]  }
   0x8   :  { %s49_s16 = sshll.u32 %s3240_s15, 4  ;;  %s75_s18 = sshll.u32 %s3241_s17, 4  ;;  %s50_s16 = int_to_ptr.vmem [resolvable:$true] %s49_s16  ;;  %s3332_s18 = int_to_ptr.vmem [resolvable:$true] %s75_s18 }
   0x9   :  { %s3076_s21 = scalar_lea.hbm %s3796_s4, 48 }
   0xa   :  { %p3077_p0 = scmp.ne.s32.totalorder %s3796_s4, %s3076_s21  ;;  %p3080_p1 = scmp.lt.u32.totalorder %s3076_s21, %s3796_s4 }
   0xc   :  { %p3082_p2 = pnand %p3080_p1, %p3077_p0 }
   0xe   :  { %3085 = shalt.err (!%p3082_p2)
}
   0xf   :  { %s3086_s25 = scalar_lea.vmem %s50_s16, 48  ;;  %s3090_s26 = scalar_lea.vmem %s50_s16, 64 }
  0x10   :  { %p3087_p3 = scmp.ne.s32.totalorder %s50_s16, %s3086_s25  ;;  %p3091_p4 = scmp.lt.s32.totalorder %s50_s16, %s50_s16 }
  0x11   :  { %p3092_p5 = scmp.lt.s32.totalorder %s3090_s26, %s3086_s25 }
  0x13   :  { %p3093_p6 = por %p3092_p5, %p3091_p4 }
  0x15   :  { %p3094_p7 = pnand %p3093_p6, %p3087_p3 }
  0x17   :  { %3097 = shalt.err (!%p3094_p7)
}
  0x18   :  { %s3242_s27 = smov 16   ;;  %s3243_s28 = smov 1  }
  0x19   :  { %55 = dma.hbm_to_vmem [thread:$0]  %s3796_s4, 48, %s50_s16, [#allocation7], %s3242_s27, %s3242_s27, %s3243_s28  }
  0x1a   :  { %s3098_s19 = scalar_lea.hbm %s3799_s7, 3072 }
  0x1b   :  { %p3099_p8 = scmp.ne.s32.totalorder %s3799_s7, %s3098_s19  ;;  %p3102_p9 = scmp.lt.u32.totalorder %s3098_s19, %s3799_s7 }
  0x1d   :  { %p3104_p10 = pnand %p3102_p9, %p3099_p8 }
  0x1f   :  { %3107 = shalt.err (!%p3104_p10)
}
  0x20   :  { %s3108_s13 = scalar_lea.vmem %s3332_s18, 3072  ;;  %p3113_p12 = scmp.lt.s32.totalorder %s3332_s18, %s3332_s18 }
  0x21   :  { %p3109_p11 = scmp.ne.s32.totalorder %s3332_s18, %s3108_s13  ;;  %p3114_p13 = scmp.lt.s32.totalorder %s3108_s13, %s3108_s13 }
  0x23   :  { %p3115_p0 = por %p3114_p13, %p3113_p12 }
  0x25   :  { %p3116_p1 = pnand %p3115_p0, %p3109_p11 }
  0x27   :  { %3119 = shalt.err (!%p3116_p1)
}
  0x28   :  { %s3244_s4 = smov 64   ;;  %s3245_s16 = smov 4  }
  0x29   :  { %81 = dma.hbm_to_vmem [thread:$0]  %s3799_s7, 3072, %s3332_s18, [#allocation10], %s3244_s4, %s3244_s4, %s3245_s16  }
  0x2a   :  { %s3246_s26 = smov [#allocation3]   ;;  %s3247_s30 = smov [#allocation8]  }
  0x2b   :  { %s35_s29 = sshll.u32 %s3246_s26, 4  ;;  %s63_s15 = sshll.u32 %s3247_s30, 4  ;;  %s36_s29 = int_to_ptr.vmem [resolvable:$true] %s35_s29  ;;  %s3366_s15 = int_to_ptr.vmem [resolvable:$true] %s63_s15 }
  0x2c   :  { %s3120_s20 = scalar_lea.hbm %s3794_s2, 48 }
  0x2d   :  { %p3121_p2 = scmp.ne.s32.totalorder %s3794_s2, %s3120_s20  ;;  %p3124_p3 = scmp.lt.u32.totalorder %s3120_s20, %s3794_s2 }
  0x2f   :  { %p3126_p4 = pnand %p3124_p3, %p3121_p2 }
  0x31   :  { %3129 = shalt.err (!%p3126_p4)
}
  0x32   :  { %s3130_s7 = scalar_lea.vmem %s36_s29, 48  ;;  %s3134_s18 = scalar_lea.vmem %s36_s29, 64 }
  0x33   :  { %p3131_p5 = scmp.ne.s32.totalorder %s36_s29, %s3130_s7  ;;  %p3135_p6 = scmp.lt.s32.totalorder %s36_s29, %s36_s29 }
  0x34   :  { %p3136_p7 = scmp.lt.s32.totalorder %s3134_s18, %s3130_s7 }
  0x36   :  { %p3137_p8 = por %p3136_p7, %p3135_p6 }
  0x38   :  { %p3138_p9 = pnand %p3137_p8, %p3131_p5 }
  0x3a   :  { %3141 = shalt.err (!%p3138_p9)
}
  0x3b   :  { %41 = dma.hbm_to_vmem [thread:$0]  %s3794_s2, 48, %s36_s29, [#allocation4], %s3242_s27, %s3242_s27, %s3243_s28  }
  0x3c   :  { %s3142_s26 = scalar_lea.hbm %s3798_s6, 48 }
  0x3d   :  { %p3143_p10 = scmp.ne.s32.totalorder %s3798_s6, %s3142_s26  ;;  %p3146_p11 = scmp.lt.u32.totalorder %s3142_s26, %s3798_s6 }
  0x3f   :  { %p3148_p12 = pnand %p3146_p11, %p3143_p10 }
  0x41   :  { %3151 = shalt.err (!%p3148_p12)
}
  0x42   :  { %s3152_s21 = scalar_lea.vmem %s3366_s15, 48  ;;  %s3156_s2 = scalar_lea.vmem %s3366_s15, 64 }
  0x43   :  { %p3153_p13 = scmp.ne.s32.totalorder %s3366_s15, %s3152_s21  ;;  %p3157_p0 = scmp.lt.s32.totalorder %s3366_s15, %s3366_s15 }
  0x44   :  { %p3158_p1 = scmp.lt.s32.totalorder %s3156_s2, %s3152_s21 }
  0x46   :  { %p3159_p2 = por %p3158_p1, %p3157_p0 }
  0x48   :  { %p3160_p3 = pnand %p3159_p2, %p3153_p13 }
  0x4a   :  { %3163 = shalt.err (!%p3160_p3)
}
  0x4b   :  { %69 = dma.hbm_to_vmem [thread:$0]  %s3798_s6, 48, %s3366_s15, [#allocation7], %s3242_s27, %s3242_s27, %s3243_s28  }
  0x4c   :  { %s3248_s23 = smov [#allocation11]   ;;  %s3249_s7 = smov [#allocation12]  }
  0x4d   :  { %s87_s13 = sshll.u32 %s3248_s23, 4  ;;  %s101_s18 = sshll.u32 %s3249_s7, 4  ;;  %s88_s13 = int_to_ptr.vmem [resolvable:$true] %s87_s13  ;;  %s3404_s18 = int_to_ptr.vmem [resolvable:$true] %s101_s18 }
  0x4e   :  { %s3164_s24 = scalar_lea.hbm %s3800_s8, 48 }
  0x4f   :  { %p3165_p4 = scmp.ne.s32.totalorder %s3800_s8, %s3164_s24  ;;  %p3168_p5 = scmp.lt.u32.totalorder %s3164_s24, %s3800_s8 }
  0x51   :  { %p3170_p6 = pnand %p3168_p5, %p3165_p4 }
  0x53   :  { %3173 = shalt.err (!%p3170_p6)
}
  0x54   :  { %s3174_s6 = scalar_lea.vmem %s88_s13, 48  ;;  %s3178_s15 = scalar_lea.vmem %s88_s13, 64 }
  0x55   :  { %p3175_p7 = scmp.ne.s32.totalorder %s88_s13, %s3174_s6  ;;  %p3179_p8 = scmp.lt.s32.totalorder %s88_s13, %s88_s13 }
  0x56   :  { %p3180_p9 = scmp.lt.s32.totalorder %s3178_s15, %s3174_s6 }
  0x58   :  { %p3181_p10 = por %p3180_p9, %p3179_p8 }
  0x5a   :  { %p3182_p11 = pnand %p3181_p10, %p3175_p7 }
  0x5c   :  { %3185 = shalt.err (!%p3182_p11)
}
  0x5d   :  { %93 = dma.hbm_to_vmem [thread:$0]  %s3800_s8, 48, %s88_s13, [#allocation10], %s3242_s27, %s3242_s27, %s3243_s28  }
  0x5e   :  { %s3186_s29 = scalar_lea.hbm %s3802_s10, 48 }
  0x5f   :  { %p3187_p12 = scmp.ne.s32.totalorder %s3802_s10, %s3186_s29  ;;  %p3190_p13 = scmp.lt.u32.totalorder %s3186_s29, %s3802_s10 }
  0x61   :  { %p3192_p0 = pnand %p3190_p13, %p3187_p12 }
  0x63   :  { %3195 = shalt.err (!%p3192_p0)
}
  0x64   :  { %s3196_s16 = scalar_lea.vmem %s3404_s18, 48  ;;  %s3200_s8 = scalar_lea.vmem %s3404_s18, 64 }
  0x65   :  { %p3197_p1 = scmp.ne.s32.totalorder %s3404_s18, %s3196_s16  ;;  %p3201_p2 = scmp.lt.s32.totalorder %s3404_s18, %s3404_s18 }
  0x66   :  { %p3202_p3 = scmp.lt.s32.totalorder %s3200_s8, %s3196_s16 }
  0x68   :  { %p3203_p4 = por %p3202_p3, %p3201_p2 }
  0x6a   :  { %p3204_p5 = pnand %p3203_p4, %p3197_p1 }
  0x6c   :  { %3207 = shalt.err (!%p3204_p5)
}
  0x6d   :  { %107 = dma.hbm_to_vmem [thread:$0]  %s3802_s10, 48, %s3404_s18, [#allocation13], %s3242_s27, %s3242_s27, %s3243_s28  }
  0x6e   :  { %3230 = dma.done.wait [#allocation4], 48  }
  0x6f   :  { %3231 = vsyncadd [#allocation4], 4294967248 }
  0x70   :  { %3232 = dma.done.wait [#allocation7], 96  }
  0x71   :  { %3233 = vsyncadd [#allocation7], 4294967200 }
  0x72   :  { %3234 = dma.done.wait [#allocation10], 3120  }
  0x73   :  { %3235 = vsyncadd [#allocation10], 4294964176 }
  0x74   :  { %3236 = dma.done.wait [#allocation13], 48  }
  0x75   :  { %3237 = vsyncadd [#allocation13], 4294967248  ;;  %vm136_vm0 = vcmask 130048   ;;  %v133_v1 = vld [vmem:[%s3792_s0] sm:$0xff]  ;;  %v135_v2 = vld [vmem:[%s3792_s0 + $0x10] sm:$0xff]  ;;  %v3250_v22 = vmov 15  }
  0x76   :  { %v134_v3 = vld [vmem:[%s3792_s0 + $0x8] sm:$0xff]  ;;  %v137_v4 = vsel %vm136_vm0, %v133_v1, 0.0  ;;  %v143_v5 = vsel %vm136_vm0, %v135_v2, 0.0  ;;  %2953 = vset.pattern.permute.xlu0 %v3250_v22  ;;  %2954 = vset.pattern.permute.xlu1 %v3250_v22  ;;  %v2958_v34 = vld [vmem:[%s3793_s1] sm:$0xff]   ;;  %vm223_vm1 = vcmask 1043456   ;;  %v2962_v43 = vld [vmem:[%s3795_s3 + $0x10] sm:$0xff]  }
  0x77   :  { %v140_v6 = vsel %vm136_vm0, %v134_v3, 0.0  ;;  %138 = vadd.xlane.f32.xlu0 %v137_v4  ;;  %144 = vadd.xlane.f32.xlu1 %v143_v5  ;;  %v2959_v38 = vld [vmem:[%s3793_s1 + $0x8] ss:$0 sps:$4 sm:$0xff]   ;;  %v2960_v41 = vld [vmem:[%s3795_s3] sm:$0xff]   ;;  %v2963_v44 = vld [vmem:[%s3795_s3 + $0x18] sm:$0xff]   ;;  %vm216_vm2 = vcmask 195584  }
  0x78   :  { %2648 = vmatprep.subr.bf16.mxu0 %v2958_v34  ;;  %v225_v40 = vsel %vm223_vm1, %v2959_v38, 0  ;;  %v2961_v42 = vld [vmem:[%s3795_s3 + $0x8] sm:$0xff]   ;;  %2656 = vmatprep.subr.bf16.mxu1 %v2960_v41  ;;  %v2964_v45 = vld [vmem:[%s3795_s3 + $0x20] sm:$0xff]   ;;  %v2966_v55 = vld [vmem:[%s3795_s3 + $0x30] sm:$0xff]   ;;  %vm786_vm3 = vcmask 261120   ;;  %vm2181_vm4 = vcmask 27648  }
  0x79   :  { %2649 = vmatpush3.bf16.msra.mxu0 %v2958_v34  ;;  %2657 = vmatpush3.bf16.msra.mxu1 %v2960_v41  ;;  %v2965_v46 = vld [vmem:[%s3795_s3 + $0x28] sm:$0xff]   ;;  %v2967_v56 = vld [vmem:[%s3795_s3 + $0x38] sm:$0xff]   ;;  %v2968_v57 = vld [vmem:[%s3797_s5] sm:$0xff]   ;;  %vm2179_vm5 = vcmask 31744   ;;  %vm2206_vm6 = vcmask 1040384   ;;  %vm2220_vm7 = vcmask 25600  }
  0x7a   :  { %2936 = vmatprep.subr.msk.bf16.mxu0 %vm223_vm1, %v2959_v38  ;;  %2658 = vmatprep.subr.bf16.mxu1 %v2961_v42  ;;  %v2969_v58 = vld [vmem:[%s3797_s5 + $0x8] sm:$0xff]   ;;  %v2970_v59 = vld [vmem:[%s3797_s5 + $0x10] sm:$0xff]   ;;  %v2971_v60 = vld [vmem:[%s3797_s5 + $0x18] sm:$0xff]   ;;  %vm2236_vm8 = vcmask 7168   ;;  %vm2238_vm9 = vcmask 33792  }
  0x7b   :  { %141 = vadd.xlane.f32.xlu0 %v140_v6  ;;  %v2972_v61 = vld [vmem:[%s3797_s5 + $0x20] sm:$0xff]   ;;  %v2973_v62 = vld [vmem:[%s3797_s5 + $0x28] sm:$0xff]   ;;  %v2986_v34 = vld [vmem:[%s3801_s9 + $0x10] sm:$0xff]  }
  0x7c   :  { %v2258_v0 = vld [vmem:[#allocation3] ss:$0 sm:$0xff]  ;;  %v2272_v38 = vld [vmem:[#allocation8] ss:$0 sm:$0xff] }
  0x7d   :  { %2651 = vmatpush3.bf16.msra.mxu0 %v225_v40  ;;  %2659 = vmatpush3.bf16.msra.mxu1 %v2961_v42 }
  0x7e   :  { %2660 = vmatprep.subr.bf16.mxu1 %v2962_v43  ;;  %2676 = vmatprep.subr.bf16.mxu0 %v2968_v57 }
  0x81   :  { %2661 = vmatpush3.bf16.msra.mxu1 %v2962_v43 }
  0x82   :  { %2662 = vmatprep.subr.bf16.mxu1 %v2963_v44 }
  0x85   :  { %2663 = vmatpush3.bf16.msra.mxu1 %v2963_v44 }
  0x86   :  { %2664 = vmatprep.subr.bf16.mxu1 %v2964_v45 }
  0x89   :  { %2665 = vmatpush3.bf16.msra.mxu1 %v2964_v45 }
  0x8a   :  { %2666 = vmatprep.subr.bf16.mxu1 %v2965_v46 }
  0x8d   :  { %2667 = vmatpush3.bf16.msra.mxu1 %v2965_v46 }
  0x8e   :  { %2668 = vmatprep.subr.bf16.mxu1 %v2966_v55 }
  0x91   :  { %2669 = vmatpush3.bf16.msra.mxu1 %v2966_v55  ;;  %v2991_v55 = vld [vmem:[%s3801_s9 + $0x38] sm:$0xff]  }
  0x92   :  { %2670 = vmatprep.subr.bf16.mxu1 %v2967_v56 }
  0x95   :  { %2671 = vmatpush3.bf16.msra.mxu1 %v2967_v56  ;;  %v2281_v56 = vld [vmem:[#allocation11] ss:$0 sm:$0xff] }
 0x104   :  { %v139_v7 = vpop.xlane.xlu0 %138  ;;  %v145_v8 = vpop.xlane.xlu1 %144 }
 0x105   :  { %v147_v9 = vmul.f32 0.0625, %v139_v7  ;;  %v149_v10 = vmul.f32 0.0625, %v145_v8 }
 0x107   :  { %v150_v11 = vsub.f32 %v133_v1, %v147_v9  ;;  %v152_v12 = vsub.f32 %v135_v2, %v149_v10  ;;  %v2974_v9 = vld [vmem:[%s3797_s5 + $0x30] sm:$0xff]   ;;  %v2975_v10 = vld [vmem:[%s3797_s5 + $0x38] sm:$0xff]  }
 0x108   :  { %v142_v13 = vpop.xlane.xlu0 %141 }
 0x109   :  { %v148_v14 = vmul.f32 0.0625, %v142_v13  ;;  %v153_v15 = vmul.f32 %v150_v11, %v150_v11  ;;  %v155_v16 = vmul.f32 %v152_v12, %v152_v12  ;;  %v2978_v13 = vld [vmem:[#allocation9 + $0x10] sm:$0xff]  }
 0x10b   :  { %v151_v17 = vsub.f32 %v134_v3, %v148_v14  ;;  %v156_v18 = vsel %vm136_vm0, %v153_v15, 0.0  ;;  %v162_v19 = vsel %vm136_vm0, %v155_v16, 0.0  ;;  %v2979_v14 = vld [vmem:[#allocation9 + $0x18] sm:$0xff]   ;;  %v2980_v15 = vld [vmem:[#allocation9 + $0x20] sm:$0xff]   ;;  %v2981_v16 = vld [vmem:[#allocation9 + $0x28] sm:$0xff]  }
 0x10c   :  { %157 = vadd.xlane.f32.xlu1 %v156_v18 }
 0x10d   :  { %v154_v20 = vmul.f32 %v151_v17, %v151_v17 }
 0x10f   :  { %v159_v21 = vsel %vm136_vm0, %v154_v20, 0.0 }
 0x110   :  { %163 = vadd.xlane.f32.xlu1 %v162_v19  ;;  %160 = vadd.xlane.f32.xlu0 %v159_v21 }
 0x199   :  { %v158_v23 = vpop.xlane.xlu1 %157 }
 0x19a   :  { %v165_v24 = vmul.f32 0.0625, %v158_v23 }
 0x19c   :  { %v168_v25 = vadd.f32 1e-05, %v165_v24 }
 0x19d   :  { %v164_v26 = vpop.xlane.xlu1 %163  ;;  %v161_v27 = vpop.xlane.xlu0 %160 }
 0x19e   :  { %3066 = vrsqrt.f32 %v168_v25  ;;  %v167_v28 = vmul.f32 0.0625, %v164_v26  ;;  %v166_v29 = vmul.f32 0.0625, %v161_v27 }
 0x1a0   :  { %v169_v30 = vadd.f32 1e-05, %v166_v29  ;;  %v170_v31 = vadd.f32 1e-05, %v167_v28 }
 0x1a2   :  { %3068 = vrsqrt.f32 %v169_v30  ;;  %v2982_v30 = vld [vmem:[#allocation9 + $0x30] sm:$0xff]  }
 0x1a3   :  { %3070 = vrsqrt.f32 %v170_v31  ;;  %v2983_v31 = vld [vmem:[#allocation9 + $0x38] sm:$0xff]  }
 0x1a8   :  { %v3067_v32 = vpop.eup %3066 }
 0x1a9   :  { %v174_v33 = vmul.f32 %v3067_v32, %v150_v11  ;;  %v2976_v11 = vld [vmem:[#allocation9] sm:$0xff]   ;;  %v2984_v32 = vld [vmem:[%s3801_s9] sm:$0xff]  }
 0x1aa   :  { %2696 = vmatprep.subr.bf16.mxu1 %v2976_v11 }
 0x1ab   :  { %179 = vperm.xlu0 %2953, %v174_v33  }
 0x1ac   :  { %v3069_v35 = vpop.eup %3068 }
 0x1ad   :  { %v175_v36 = vmul.f32 %v3069_v35, %v151_v17  ;;  %v3071_v37 = vpop.eup %3070  ;;  %v2263_v17 = vld [vmem:[#allocation6] ss:$0 sm:$0xff]  ;;  %v2987_v35 = vld [vmem:[%s3801_s9 + $0x18] sm:$0xff]  }
 0x1ae   :  { %v176_v39 = vmul.f32 %v3071_v37, %v152_v12  ;;  %v2977_v12 = vld [vmem:[#allocation9 + $0x8] sm:$0xff]   ;;  %v2989_v37 = vld [vmem:[%s3801_s9 + $0x28] sm:$0xff]  }
 0x1af   :  { %184 = vperm.xlu1 %2954, %v175_v36  }
 0x1b3   :  { %189 = vperm.xlu1 %2954, %v176_v39  }
 0x22a   :  { %v180_v47 = vpop.permute.xlu0 %179 }
 0x22b   :  { %v3484_v49 = vsel %vm136_vm0, %v174_v33, %v180_v47  ;;  %v2985_v33 = vld [vmem:[%s3801_s9 + $0x8] sm:$0xff]  }
 0x22e   :  { %v185_v48 = vpop.permute.xlu1 %184 }
 0x22f   :  { %v3487_v50 = vsel %vm136_vm0, %v175_v36, %v185_v48  ;;  %v2988_v36 = vld [vmem:[%s3801_s9 + $0x20] sm:$0xff]  }
 0x230   :  { %v195_v51 = vpack.c.bf16 %v3487_v50, %v3484_v49 }
 0x232   :  { %v190_v52 = vpop.permute.xlu1 %189  ;;  %2652 = vmatprep.mubr.msk.bf16.mxu0 %vm216_vm2, %v195_v51 }
 0x233   :  { %v3493_v53 = vsel %vm136_vm0, %v176_v39, %v190_v52 }
 0x234   :  { %v196_v54 = vpack.c.bf16 %v3493_v53, %v3493_v53 }
 0x236   :  { %2653 = vmatmul.mubr.msk.bf16.vlgmr.msra.gmra.mrb[0].mxu0 %vm216_vm2, %v196_v54  ;;  %v2990_v54 = vld [vmem:[%s3801_s9 + $0x30] sm:$0xff]  }
 0x237   :  { %2677 = vmatpush3.bf16.msra.mxu0 %v2968_v57 }
 0x238   :  { %2678 = vmatprep.subr.bf16.mxu0 %v2969_v58 }
 0x23b   :  { %2679 = vmatpush3.bf16.msra.mxu0 %v2969_v58 }
 0x23c   :  { %2680 = vmatprep.subr.bf16.mxu0 %v2970_v59 }
 0x23f   :  { %2681 = vmatpush3.bf16.msra.mxu0 %v2970_v59 }
 0x240   :  { %2682 = vmatprep.subr.bf16.mxu0 %v2971_v60 }
 0x243   :  { %2683 = vmatpush3.bf16.msra.mxu0 %v2971_v60 }
 0x244   :  { %2684 = vmatprep.subr.bf16.mxu0 %v2972_v61 }
 0x247   :  { %2685 = vmatpush3.bf16.msra.mxu0 %v2972_v61 }
 0x248   :  { %2686 = vmatprep.subr.bf16.mxu0 %v2973_v62 }
 0x24b   :  { %2687 = vmatpush3.bf16.msra.mxu0 %v2973_v62 }
 0x24c   :  { %2688 = vmatprep.subr.bf16.mxu0 %v2974_v9 }
 0x24f   :  { %2689 = vmatpush3.bf16.msra.mxu0 %v2974_v9 }
 0x250   :  { %2690 = vmatprep.subr.bf16.mxu0 %v2975_v10 }
 0x253   :  { %2691 = vmatpush3.bf16.msra.mxu0 %v2975_v10 }
 0x254   :  { %2716 = vmatprep.subr.bf16.mxu0 %v2984_v32 }
 0x309   :  { %v2654_v63 = vpop.f32.mrb[0].mxu0 }
 0x30a   :  { %v261_v1 = vpop.f32.mrb[1].mxu0  ;;  %v270_v3 = vadd.f32 %v2654_v63, %v2258_v0 }
 0x30b   :  { %v2655_v2 = vpop.f32.mrb[2].mxu0  ;;  %v262_v5 = vadd.f32 %v2258_v0, %v261_v1 }
 0x30c   :  { %v264_v4 = vpop.f32.mrb[3].mxu0  ;;  %v276_v8 = vpack.c.bf16 %v270_v3, %v270_v3 }
 0x30d   :  { %v265_v6 = vadd.f32 %v2258_v0, %v264_v4 }
 0x30f   :  { %v275_v7 = vpack.c.bf16 %v265_v6, %v262_v5  ;;  %v2992_v5 = vld [vmem:[%s3803_s11] sm:$0xff]   ;;  %v2993_v6 = vld [vmem:[%s3803_s11 + $0x8] sm:$0xff]  }
 0x311   :  { %2672 = vmatprep.mubr.bf16.mxu1 %v275_v7 }
 0x312   :  { %2673 = vmatmul.mubr.bf16.vlgmr.msra.gmra.mrb[0].mxu1 %v276_v8  ;;  %v2290_v8 = vld [vmem:[#allocation12] ss:$0 sm:$0xff] }
 0x313   :  { %2697 = vmatpush3.bf16.msra.mxu1 %v2976_v11 }
 0x314   :  { %2698 = vmatprep.subr.bf16.mxu1 %v2977_v12 }
 0x317   :  { %2699 = vmatpush3.bf16.msra.mxu1 %v2977_v12 }
 0x318   :  { %2700 = vmatprep.subr.bf16.mxu1 %v2978_v13 }
 0x31b   :  { %2701 = vmatpush3.bf16.msra.mxu1 %v2978_v13 }
 0x31c   :  { %2702 = vmatprep.subr.bf16.mxu1 %v2979_v14 }
 0x31f   :  { %2703 = vmatpush3.bf16.msra.mxu1 %v2979_v14 }
 0x320   :  { %2704 = vmatprep.subr.bf16.mxu1 %v2980_v15 }
 0x323   :  { %2705 = vmatpush3.bf16.msra.mxu1 %v2980_v15 }
 0x324   :  { %2706 = vmatprep.subr.bf16.mxu1 %v2981_v16 }
 0x327   :  { %2707 = vmatpush3.bf16.msra.mxu1 %v2981_v16 }
 0x328   :  { %2708 = vmatprep.subr.bf16.mxu1 %v2982_v30 }
 0x32b   :  { %2709 = vmatpush3.bf16.msra.mxu1 %v2982_v30 }
 0x32c   :  { %2710 = vmatprep.subr.bf16.mxu1 %v2983_v31 }
 0x32f   :  { %2711 = vmatpush3.bf16.msra.mxu1 %v2983_v31 }
 0x330   :  { %2736 = vmatprep.subr.bf16.mxu1 %v2992_v5 }
 0x3e5   :  { %v2674_v18 = vpop.f32.mrb[0].mxu1 }
 0x3e6   :  { %v391_v19 = vadd.f32 %v2674_v18, %v2263_v17  ;;  %v382_v20 = vpop.f32.mrb[1].mxu1  ;;  %v2995_v18 = vld [vmem:[%s3793_s1 + $0x14] ss:$0 sps:$4 sm:$0xff]  }
 0x3e7   :  { %v383_v21 = vadd.f32 %v2263_v17, %v382_v20  ;;  %v2675_v22 = vpop.f32.mrb[2].mxu1  ;;  %v2996_v20 = vld [vmem:[%s3795_s3 + $0x40] sm:$0xff]  }
 0x3e8   :  { %v385_v23 = vpop.f32.mrb[3].mxu1  ;;  %v398_v25 = vmax.f32 %v391_v19, 0.0  ;;  %v874_v19 = vsel %vm223_vm1, %v2995_v18, 0  ;;  %v2998_v22 = vld [vmem:[%s3795_s3 + $0x50] sm:$0xff]  }
 0x3e9   :  { %v386_v24 = vadd.f32 %v2263_v17, %v385_v23  ;;  %v396_v26 = vmax.f32 %v383_v21, 0.0  ;;  %v2994_v17 = vld [vmem:[%s3793_s1 + $0xc] sm:$0xff]   ;;  %v2999_v23 = vld [vmem:[%s3795_s3 + $0x58] sm:$0xff]  }
 0x3ea   :  { %v400_v29 = vpack.c.bf16 %v398_v25, %v398_v25  ;;  %v2997_v21 = vld [vmem:[%s3795_s3 + $0x48] sm:$0xff]  }
 0x3eb   :  { %v397_v27 = vmax.f32 %v386_v24, 0.0  ;;  %v3000_v24 = vld [vmem:[%s3795_s3 + $0x60] sm:$0xff]   ;;  %v3001_v25 = vld [vmem:[%s3795_s3 + $0x68] sm:$0xff]  }
 0x3ed   :  { %v399_v28 = vpack.c.bf16 %v397_v27, %v396_v26 }
 0x3ef   :  { %2692 = vmatprep.mubr.bf16.mxu0 %v399_v28 }
 0x3f0   :  { %2693 = vmatmul.mubr.bf16.vlgmr.msra.gmra.mrb[4].mxu0 %v400_v29 }
 0x3f1   :  { %2717 = vmatpush3.bf16.msra.mxu0 %v2984_v32 }
 0x3f2   :  { %2718 = vmatprep.subr.bf16.mxu0 %v2985_v33 }
 0x3f5   :  { %2719 = vmatpush3.bf16.msra.mxu0 %v2985_v33 }
 0x3f6   :  { %2720 = vmatprep.subr.bf16.mxu0 %v2986_v34 }
 0x3f9   :  { %2721 = vmatpush3.bf16.msra.mxu0 %v2986_v34 }
 0x3fa   :  { %2722 = vmatprep.subr.bf16.mxu0 %v2987_v35 }
 0x3fd   :  { %2723 = vmatpush3.bf16.msra.mxu0 %v2987_v35  ;;  %v3005_v35 = vld [vmem:[%s3797_s5 + $0x48] sm:$0xff]  }
 0x3fe   :  { %2724 = vmatprep.subr.bf16.mxu0 %v2988_v36 }
 0x401   :  { %2725 = vmatpush3.bf16.msra.mxu0 %v2988_v36  ;;  %v3006_v36 = vld [vmem:[%s3797_s5 + $0x50] sm:$0xff]  }
 0x402   :  { %2726 = vmatprep.subr.bf16.mxu0 %v2989_v37 }
 0x405   :  { %2727 = vmatpush3.bf16.msra.mxu0 %v2989_v37  ;;  %v3007_v37 = vld [vmem:[%s3797_s5 + $0x58] sm:$0xff]  }
 0x406   :  { %2728 = vmatprep.subr.bf16.mxu0 %v2990_v54 }
 0x409   :  { %2729 = vmatpush3.bf16.msra.mxu0 %v2990_v54  ;;  %v3011_v54 = vld [vmem:[%s3797_s5 + $0x78] sm:$0xff]  }
 0x40a   :  { %2730 = vmatprep.subr.bf16.mxu0 %v2991_v55 }
 0x40d   :  { %2731 = vmatpush3.bf16.msra.mxu0 %v2991_v55  ;;  %v3012_v55 = vld [vmem:[#allocation9 + $0x40] sm:$0xff]  }
 0x40e   :  { %2744 = vmatprep.subr.bf16.mxu0 %v2994_v17 }
 0x4c3   :  { %v2694_v39 = vpop.f32.mrb[4].mxu0 }
 0x4c4   :  { %v515_v40 = vadd.f32 %v2694_v39, %v2272_v38  ;;  %v506_v41 = vpop.f32.mrb[5].mxu0  ;;  %v3009_v39 = vld [vmem:[%s3797_s5 + $0x68] sm:$0xff]  }
 0x4c5   :  { %v507_v42 = vadd.f32 %v2272_v38, %v506_v41  ;;  %v2695_v43 = vpop.f32.mrb[6].mxu0  ;;  %v2306_v41 = vld [vmem:[#allocation3 + $0x1] ss:$0 sm:$0xff] }
 0x4c6   :  { %v509_v44 = vpop.f32.mrb[7].mxu0  ;;  %v522_v46 = vmax.f32 %v515_v40, 0.0 }
 0x4c7   :  { %v510_v45 = vadd.f32 %v2272_v38, %v509_v44  ;;  %v520_v47 = vmax.f32 %v507_v42, 0.0  ;;  %v3008_v38 = vld [vmem:[%s3797_s5 + $0x60] sm:$0xff]  }
 0x4c8   :  { %v524_v52 = vpack.c.bf16 %v522_v46, %v522_v46 }
 0x4c9   :  { %v521_v48 = vmax.f32 %v510_v45, 0.0 }
 0x4cb   :  { %v523_v51 = vpack.c.bf16 %v521_v48, %v520_v47 }
 0x4cd   :  { %2712 = vmatprep.mubr.bf16.mxu1 %v523_v51 }
 0x4ce   :  { %2713 = vmatmul.mubr.bf16.vlgmr.msra.gmra.mrb[4].mxu1 %v524_v52  ;;  %v3010_v52 = vld [vmem:[%s3797_s5 + $0x70] sm:$0xff]  }
 0x4cf   :  { %2737 = vmatpush3.bf16.msra.mxu1 %v2992_v5 }
 0x4d0   :  { %2738 = vmatprep.subr.bf16.mxu1 %v2993_v6 }
 0x4d3   :  { %2739 = vmatpush3.bf16.msra.mxu1 %v2993_v6 }
 0x4d4   :  { %2752 = vmatprep.subr.bf16.mxu1 %v2996_v20 }
 0x5a1   :  { %v2714_v57 = vpop.f32.mrb[4].mxu1 }
 0x5a2   :  { %v639_v58 = vadd.f32 %v2714_v57, %v2281_v56  ;;  %v630_v59 = vpop.f32.mrb[5].mxu1  ;;  %v3014_v57 = vld [vmem:[#allocation9 + $0x50] sm:$0xff]  }
 0x5a3   :  { %v631_v60 = vadd.f32 %v2281_v56, %v630_v59  ;;  %v2715_v61 = vpop.f32.mrb[6].mxu1  ;;  %v3016_v59 = vld [vmem:[#allocation9 + $0x60] sm:$0xff]  }
 0x5a4   :  { %v633_v62 = vpop.f32.mrb[7].mxu1  ;;  %v646_v0 = vmax.f32 %v639_v58, 0.0  ;;  %v3015_v58 = vld [vmem:[#allocation9 + $0x58] sm:$0xff]  }
 0x5a5   :  { %v634_v63 = vadd.f32 %v2281_v56, %v633_v62  ;;  %v644_v1 = vmax.f32 %v631_v60, 0.0  ;;  %v3013_v56 = vld [vmem:[#allocation9 + $0x48] sm:$0xff]   ;;  %v2327_v61 = vld [vmem:[#allocation6 + $0x1] ss:$0 sm:$0xff] }
 0x5a6   :  { %v648_v4 = vpack.c.bf16 %v646_v0, %v646_v0  ;;  %v3017_v60 = vld [vmem:[#allocation9 + $0x68] sm:$0xff]  }
 0x5a7   :  { %v645_v2 = vmax.f32 %v634_v63, 0.0 }
 0x5a9   :  { %v647_v3 = vpack.c.bf16 %v645_v2, %v644_v1 }
 0x5ab   :  { %2732 = vmatprep.mubr.bf16.mxu0 %v647_v3 }
 0x5ac   :  { %2733 = vmatmul.mubr.bf16.vlgmr.msra.gmra.mrb[8].mxu0 %v648_v4 }
 0x5ad   :  { %2745 = vmatpush3.bf16.msra.mxu0 %v2994_v17  ;;  %v3025_v17 = vld [vmem:[%s3801_s9 + $0x68] sm:$0xff]  }
 0x5ae   :  { %2937 = vmatprep.subr.msk.bf16.mxu0 %vm223_vm1, %v2995_v18  ;;  %v2352_v18 = vld [vmem:[#allocation8 + $0x1] ss:$0 sm:$0xff] }
 0x5b1   :  { %2747 = vmatpush3.bf16.msra.mxu0 %v874_v19 }
 0x67f   :  { %v2734_v7 = vpop.f32.mrb[8].mxu0 }
 0x680   :  { %v754_v9 = vpop.f32.mrb[9].mxu0  ;;  %v763_v11 = vadd.f32 %v2734_v7, %v2290_v8 }
 0x681   :  { %v2735_v10 = vpop.f32.mrb[10].mxu0  ;;  %v755_v13 = vadd.f32 %v2290_v8, %v754_v9 }
 0x682   :  { %v757_v12 = vpop.f32.mrb[11].mxu0  ;;  %v769_v16 = vpack.c.bf16 %v763_v11, %v763_v11  ;;  %v3018_v10 = vld [vmem:[#allocation9 + $0x70] sm:$0xff]   ;;  %v3019_v11 = vld [vmem:[#allocation9 + $0x78] sm:$0xff]  }
 0x683   :  { %v758_v14 = vadd.f32 %v2290_v8, %v757_v12  ;;  %v3020_v12 = vld [vmem:[%s3801_s9 + $0x40] sm:$0xff]  }
 0x685   :  { %v768_v15 = vpack.c.bf16 %v758_v14, %v755_v13  ;;  %v3021_v13 = vld [vmem:[%s3801_s9 + $0x48] sm:$0xff]   ;;  %v3022_v14 = vld [vmem:[%s3801_s9 + $0x50] sm:$0xff]  }
 0x687   :  { %2740 = vmatprep.mubr.msk.bf16.mxu1 %vm786_vm3, %v768_v15  ;;  %v3023_v15 = vld [vmem:[%s3801_s9 + $0x58] sm:$0xff]  }
 0x688   :  { %2741 = vmatmul.mubr.msk.bf16.vlgmr.msra.gmra.mrb[8].mxu1 %vm786_vm3, %v769_v16  ;;  %v3024_v16 = vld [vmem:[%s3801_s9 + $0x60] sm:$0xff]  }
 0x689   :  { %2753 = vmatpush3.bf16.msra.mxu1 %v2996_v20 }
 0x68a   :  { %2754 = vmatprep.subr.bf16.mxu1 %v2997_v21 }
 0x68d   :  { %2755 = vmatpush3.bf16.msra.mxu1 %v2997_v21 }
 0x68e   :  { %2756 = vmatprep.subr.bf16.mxu1 %v2998_v22 }
 0x691   :  { %2757 = vmatpush3.bf16.msra.mxu1 %v2998_v22 }
 0x692   :  { %2758 = vmatprep.subr.bf16.mxu1 %v2999_v23 }
 0x695   :  { %2759 = vmatpush3.bf16.msra.mxu1 %v2999_v23 }
 0x696   :  { %2760 = vmatprep.subr.bf16.mxu1 %v3000_v24 }
 0x699   :  { %2761 = vmatpush3.bf16.msra.mxu1 %v3000_v24 }
 0x69a   :  { %2762 = vmatprep.subr.bf16.mxu1 %v3001_v25 }
 0x69d   :  { %2763 = vmatpush3.bf16.msra.mxu1 %v3001_v25 }
 0x75b   :  { %v2742_v26 = vpop.f32.mrb[8].mxu1 }
 0x75c   :  { %v827_v27 = vpop.f32.mrb[9].mxu1  ;;  %v3587_v29 = vadd.f32 %v2742_v26, %v3493_v53  ;;  %v3002_v53 = vld [vmem:[%s3795_s3 + $0x70] sm:$0xff]  }
 0x75d   :  { %v2743_v28 = vpop.f32.mrb[10].mxu1  ;;  %v3590_v31 = vadd.f32 %v827_v27, %v3484_v49  ;;  %2764 = vmatprep.subr.bf16.mxu1 %v3002_v53  ;;  %v3003_v49 = vld [vmem:[%s3795_s3 + $0x78] sm:$0xff]  }
 0x75e   :  { %v830_v30 = vpop.f32.mrb[11].mxu1  ;;  %v845_v34 = vpack.c.bf16 %v3587_v29, %v3587_v29  ;;  %2765 = vmatpush3.bf16.msra.mxu1 %v3002_v53  ;;  %v3027_v53 = vld [vmem:[%s3801_s9 + $0x78] sm:$0xff]  }
 0x75f   :  { %v3593_v32 = vadd.f32 %v830_v30, %v3487_v50  ;;  %2766 = vmatprep.subr.bf16.mxu1 %v3003_v49  ;;  %v3004_v50 = vld [vmem:[%s3797_s5 + $0x40] sm:$0xff]  }
 0x760   :  { %2772 = vmatprep.subr.bf16.mxu0 %v3004_v50 }
 0x761   :  { %v844_v33 = vpack.c.bf16 %v3593_v32, %v3590_v31 }
 0x762   :  { %2767 = vmatpush3.bf16.msra.mxu1 %v3003_v49  ;;  %v2361_v49 = vld [vmem:[#allocation11 + $0x1] ss:$0 sm:$0xff] }
 0x763   :  { %2748 = vmatprep.mubr.msk.bf16.mxu0 %vm216_vm2, %v844_v33  ;;  %2792 = vmatprep.subr.bf16.mxu1 %v3012_v55 }
 0x764   :  { %2749 = vmatmul.mubr.msk.bf16.vlgmr.msra.gmra.mrb[12].mxu0 %vm216_vm2, %v845_v34  ;;  %v3026_v34 = vld [vmem:[%s3801_s9 + $0x70] sm:$0xff]  }
 0x765   :  { %2773 = vmatpush3.bf16.msra.mxu0 %v3004_v50 }
 0x766   :  { %2774 = vmatprep.subr.bf16.mxu0 %v3005_v35 }
 0x769   :  { %2775 = vmatpush3.bf16.msra.mxu0 %v3005_v35 }
 0x76a   :  { %2776 = vmatprep.subr.bf16.mxu0 %v3006_v36 }
 0x76d   :  { %2777 = vmatpush3.bf16.msra.mxu0 %v3006_v36 }
 0x76e   :  { %2778 = vmatprep.subr.bf16.mxu0 %v3007_v37 }
 0x771   :  { %2779 = vmatpush3.bf16.msra.mxu0 %v3007_v37 }
 0x772   :  { %2780 = vmatprep.subr.bf16.mxu0 %v3008_v38 }
 0x775   :  { %2781 = vmatpush3.bf16.msra.mxu0 %v3008_v38 }
 0x776   :  { %2782 = vmatprep.subr.bf16.mxu0 %v3009_v39 }
 0x779   :  { %2783 = vmatpush3.bf16.msra.mxu0 %v3009_v39 }
 0x77a   :  { %2784 = vmatprep.subr.bf16.mxu0 %v3010_v52 }
 0x77d   :  { %2785 = vmatpush3.bf16.msra.mxu0 %v3010_v52 }
 0x77e   :  { %2786 = vmatprep.subr.bf16.mxu0 %v3011_v54 }
 0x781   :  { %2787 = vmatpush3.bf16.msra.mxu0 %v3011_v54 }
 0x782   :  { %2812 = vmatprep.subr.bf16.mxu0 %v3020_v12 }
 0x837   :  { %v2750_v40 = vpop.f32.mrb[12].mxu0 }
 0x838   :  { %v910_v42 = vpop.f32.mrb[13].mxu0  ;;  %v919_v44 = vadd.f32 %v2750_v40, %v2306_v41 }
 0x839   :  { %v2751_v43 = vpop.f32.mrb[14].mxu0  ;;  %v911_v46 = vadd.f32 %v2306_v41, %v910_v42 }
 0x83a   :  { %v913_v45 = vpop.f32.mrb[15].mxu0  ;;  %v925_v51 = vpack.c.bf16 %v919_v44, %v919_v44 }
 0x83b   :  { %v914_v47 = vadd.f32 %v2306_v41, %v913_v45 }
 0x83d   :  { %v924_v48 = vpack.c.bf16 %v914_v47, %v911_v46  ;;  %v3028_v46 = vld [vmem:[%s3803_s11 + $0x10] sm:$0xff]   ;;  %v3029_v47 = vld [vmem:[%s3803_s11 + $0x18] sm:$0xff]  }
 0x83f   :  { %2768 = vmatprep.mubr.bf16.mxu1 %v924_v48 }
 0x840   :  { %2769 = vmatmul.mubr.bf16.vlgmr.msra.gmra.mrb[12].mxu1 %v925_v51  ;;  %v2386_v51 = vld [vmem:[#allocation12 + $0x1] ss:$0 sm:$0xff] }
 0x841   :  { %2793 = vmatpush3.bf16.msra.mxu1 %v3012_v55 }
 0x842   :  { %2794 = vmatprep.subr.bf16.mxu1 %v3013_v56 }
 0x845   :  { %2795 = vmatpush3.bf16.msra.mxu1 %v3013_v56 }
 0x846   :  { %2796 = vmatprep.subr.bf16.mxu1 %v3014_v57 }
 0x849   :  { %2797 = vmatpush3.bf16.msra.mxu1 %v3014_v57 }
 0x84a   :  { %2798 = vmatprep.subr.bf16.mxu1 %v3015_v58 }
 0x84d   :  { %2799 = vmatpush3.bf16.msra.mxu1 %v3015_v58 }
 0x84e   :  { %2800 = vmatprep.subr.bf16.mxu1 %v3016_v59 }
 0x851   :  { %2801 = vmatpush3.bf16.msra.mxu1 %v3016_v59 }
 0x852   :  { %2802 = vmatprep.subr.bf16.mxu1 %v3017_v60 }
 0x855   :  { %2803 = vmatpush3.bf16.msra.mxu1 %v3017_v60 }
 0x856   :  { %2804 = vmatprep.subr.bf16.mxu1 %v3018_v10 }
 0x859   :  { %2805 = vmatpush3.bf16.msra.mxu1 %v3018_v10 }
 0x85a   :  { %2806 = vmatprep.subr.bf16.mxu1 %v3019_v11 }
 0x85d   :  { %2807 = vmatpush3.bf16.msra.mxu1 %v3019_v11 }
 0x85e   :  { %2832 = vmatprep.subr.bf16.mxu1 %v3028_v46 }
 0x913   :  { %v2770_v62 = vpop.f32.mrb[12].mxu1 }
 0x914   :  { %v1042_v63 = vadd.f32 %v2770_v62, %v2327_v61  ;;  %v1033_v0 = vpop.f32.mrb[13].mxu1  ;;  %v3031_v62 = vld [vmem:[%s3793_s1 + $0x20] ss:$0 sps:$4 sm:$0xff]  }
 0x915   :  { %v1034_v1 = vadd.f32 %v2327_v61, %v1033_v0  ;;  %v2771_v2 = vpop.f32.mrb[14].mxu1  ;;  %v3032_v0 = vld [vmem:[%s3795_s3 + $0x80] sm:$0xff]  }
 0x916   :  { %v1036_v3 = vpop.f32.mrb[15].mxu1  ;;  %v1049_v5 = vmax.f32 %v1042_v63, 0.0  ;;  %v1531_v63 = vsel %vm223_vm1, %v3031_v62, 0  ;;  %v3034_v2 = vld [vmem:[%s3795_s3 + $0x90] sm:$0xff]  }
 0x917   :  { %v1037_v4 = vadd.f32 %v2327_v61, %v1036_v3  ;;  %v1047_v6 = vmax.f32 %v1034_v1, 0.0  ;;  %v3030_v61 = vld [vmem:[%s3793_s1 + $0x18] sm:$0xff]   ;;  %v3033_v1 = vld [vmem:[%s3795_s3 + $0x88] sm:$0xff]  }
 0x918   :  { %v1051_v9 = vpack.c.bf16 %v1049_v5, %v1049_v5  ;;  %v3035_v3 = vld [vmem:[%s3795_s3 + $0x98] sm:$0xff]   ;;  %v3037_v5 = vld [vmem:[%s3795_s3 + $0xa8] sm:$0xff]  }
 0x919   :  { %v1048_v7 = vmax.f32 %v1037_v4, 0.0  ;;  %v3036_v4 = vld [vmem:[%s3795_s3 + $0xa0] sm:$0xff]  }
 0x91b   :  { %v1050_v8 = vpack.c.bf16 %v1048_v7, %v1047_v6 }
 0x91d   :  { %2788 = vmatprep.mubr.bf16.mxu0 %v1050_v8 }
 0x91e   :  { %2789 = vmatmul.mubr.bf16.vlgmr.msra.gmra.mrb[16].mxu0 %v1051_v9 }
 0x91f   :  { %2813 = vmatpush3.bf16.msra.mxu0 %v3020_v12 }
 0x920   :  { %2814 = vmatprep.subr.bf16.mxu0 %v3021_v13 }
 0x923   :  { %2815 = vmatpush3.bf16.msra.mxu0 %v3021_v13 }
 0x924   :  { %2816 = vmatprep.subr.bf16.mxu0 %v3022_v14 }
 0x927   :  { %2817 = vmatpush3.bf16.msra.mxu0 %v3022_v14 }
 0x928   :  { %2818 = vmatprep.subr.bf16.mxu0 %v3023_v15 }
 0x92b   :  { %2819 = vmatpush3.bf16.msra.mxu0 %v3023_v15  ;;  %v3041_v15 = vld [vmem:[%s3797_s5 + $0x88] sm:$0xff]  }
 0x92c   :  { %2820 = vmatprep.subr.bf16.mxu0 %v3024_v16 }
 0x92f   :  { %2821 = vmatpush3.bf16.msra.mxu0 %v3024_v16  ;;  %v3042_v16 = vld [vmem:[%s3797_s5 + $0x90] sm:$0xff]  }
 0x930   :  { %2822 = vmatprep.subr.bf16.mxu0 %v3025_v17 }
 0x933   :  { %2823 = vmatpush3.bf16.msra.mxu0 %v3025_v17  ;;  %v3043_v17 = vld [vmem:[%s3797_s5 + $0x98] sm:$0xff]  }
 0x934   :  { %2824 = vmatprep.subr.bf16.mxu0 %v3026_v34 }
 0x937   :  { %2825 = vmatpush3.bf16.msra.mxu0 %v3026_v34  ;;  %v3047_v34 = vld [vmem:[%s3797_s5 + $0xb8] sm:$0xff]  }
 0x938   :  { %2826 = vmatprep.subr.bf16.mxu0 %v3027_v53 }
 0x93b   :  { %2827 = vmatpush3.bf16.msra.mxu0 %v3027_v53  ;;  %v3048_v53 = vld [vmem:[#allocation9 + $0x80] sm:$0xff]  }
 0x93c   :  { %2840 = vmatprep.subr.bf16.mxu0 %v3030_v61 }
 0x9f1   :  { %v2790_v19 = vpop.f32.mrb[16].mxu0 }
 0x9f2   :  { %v1168_v20 = vadd.f32 %v2790_v19, %v2352_v18  ;;  %v1159_v21 = vpop.f32.mrb[17].mxu0  ;;  %v3045_v19 = vld [vmem:[%s3797_s5 + $0xa8] sm:$0xff]  }
 0x9f3   :  { %v1160_v22 = vadd.f32 %v2352_v18, %v1159_v21  ;;  %v2791_v23 = vpop.f32.mrb[18].mxu0  ;;  %v2406_v21 = vld [vmem:[#allocation3 + $0x2] ss:$0 sm:$0xff] }
 0x9f4   :  { %v1162_v24 = vpop.f32.mrb[19].mxu0  ;;  %v1175_v26 = vmax.f32 %v1168_v20, 0.0 }
 0x9f5   :  { %v1163_v25 = vadd.f32 %v2352_v18, %v1162_v24  ;;  %v1173_v27 = vmax.f32 %v1160_v22, 0.0  ;;  %v3044_v18 = vld [vmem:[%s3797_s5 + $0xa0] sm:$0xff]  }
 0x9f6   :  { %v1177_v33 = vpack.c.bf16 %v1175_v26, %v1175_v26 }
 0x9f7   :  { %v1174_v28 = vmax.f32 %v1163_v25, 0.0 }
 0x9f9   :  { %v1176_v30 = vpack.c.bf16 %v1174_v28, %v1173_v27 }
 0x9fb   :  { %2808 = vmatprep.mubr.bf16.mxu1 %v1176_v30 }
 0x9fc   :  { %2809 = vmatmul.mubr.bf16.vlgmr.msra.gmra.mrb[16].mxu1 %v1177_v33  ;;  %v3046_v33 = vld [vmem:[%s3797_s5 + $0xb0] sm:$0xff]  }
 0x9fd   :  { %2833 = vmatpush3.bf16.msra.mxu1 %v3028_v46 }
 0x9fe   :  { %2834 = vmatprep.subr.bf16.mxu1 %v3029_v47 }
 0xa01   :  { %2835 = vmatpush3.bf16.msra.mxu1 %v3029_v47 }
 0xa02   :  { %2848 = vmatprep.subr.bf16.mxu1 %v3032_v0 }
 0xacf   :  { %v2810_v50 = vpop.f32.mrb[16].mxu1 }
 0xad0   :  { %v1294_v35 = vadd.f32 %v2810_v50, %v2361_v49  ;;  %v1285_v36 = vpop.f32.mrb[17].mxu1  ;;  %v3050_v50 = vld [vmem:[#allocation9 + $0x90] sm:$0xff]  }
 0xad1   :  { %v1286_v37 = vadd.f32 %v2361_v49, %v1285_v36  ;;  %v2811_v38 = vpop.f32.mrb[18].mxu1  ;;  %v3052_v36 = vld [vmem:[#allocation9 + $0xa0] sm:$0xff]  }
 0xad2   :  { %v1288_v39 = vpop.f32.mrb[19].mxu1  ;;  %v1301_v41 = vmax.f32 %v1294_v35, 0.0  ;;  %v3051_v35 = vld [vmem:[#allocation9 + $0x98] sm:$0xff]  }
 0xad3   :  { %v1289_v40 = vadd.f32 %v2361_v49, %v1288_v39  ;;  %v1299_v42 = vmax.f32 %v1286_v37, 0.0  ;;  %v3049_v49 = vld [vmem:[#allocation9 + $0x88] sm:$0xff]   ;;  %v2427_v38 = vld [vmem:[#allocation6 + $0x2] ss:$0 sm:$0xff] }
 0xad4   :  { %v1303_v45 = vpack.c.bf16 %v1301_v41, %v1301_v41  ;;  %v3053_v37 = vld [vmem:[#allocation9 + $0xa8] sm:$0xff]  }
 0xad5   :  { %v1300_v43 = vmax.f32 %v1289_v40, 0.0 }
 0xad7   :  { %v1302_v44 = vpack.c.bf16 %v1300_v43, %v1299_v42 }
 0xad9   :  { %2828 = vmatprep.mubr.bf16.mxu0 %v1302_v44 }
 0xada   :  { %2829 = vmatmul.mubr.bf16.vlgmr.msra.gmra.mrb[20].mxu0 %v1303_v45 }
 0xadb   :  { %2841 = vmatpush3.bf16.msra.mxu0 %v3030_v61  ;;  %v3061_v61 = vld [vmem:[%s3801_s9 + $0xa8] sm:$0xff]  }
 0xadc   :  { %2938 = vmatprep.subr.msk.bf16.mxu0 %vm223_vm1, %v3031_v62  ;;  %v2452_v62 = vld [vmem:[#allocation8 + $0x2] ss:$0 sm:$0xff] }
 0xadf   :  { %2843 = vmatpush3.bf16.msra.mxu0 %v1531_v63 }
 0xbad   :  { %v2830_v48 = vpop.f32.mrb[20].mxu0 }
 0xbae   :  { %v1411_v52 = vpop.f32.mrb[21].mxu0  ;;  %v1420_v55 = vadd.f32 %v2830_v48, %v2386_v51 }
 0xbaf   :  { %v2831_v54 = vpop.f32.mrb[22].mxu0  ;;  %v1412_v57 = vadd.f32 %v2386_v51, %v1411_v52 }
 0xbb0   :  { %v1414_v56 = vpop.f32.mrb[23].mxu0  ;;  %v1426_v60 = vpack.c.bf16 %v1420_v55, %v1420_v55  ;;  %v3054_v54 = vld [vmem:[#allocation9 + $0xb0] sm:$0xff]   ;;  %v3055_v55 = vld [vmem:[#allocation9 + $0xb8] sm:$0xff]  }
 0xbb1   :  { %v1415_v58 = vadd.f32 %v2386_v51, %v1414_v56  ;;  %v3056_v56 = vld [vmem:[%s3801_s9 + $0x80] sm:$0xff]  }
 0xbb3   :  { %v1425_v59 = vpack.c.bf16 %v1415_v58, %v1412_v57  ;;  %v3057_v57 = vld [vmem:[%s3801_s9 + $0x88] sm:$0xff]   ;;  %v3058_v58 = vld [vmem:[%s3801_s9 + $0x90] sm:$0xff]  }
 0xbb5   :  { %2836 = vmatprep.mubr.msk.bf16.mxu1 %vm786_vm3, %v1425_v59  ;;  %v3059_v59 = vld [vmem:[%s3801_s9 + $0x98] sm:$0xff]  }
 0xbb6   :  { %2837 = vmatmul.mubr.msk.bf16.vlgmr.msra.gmra.mrb[20].mxu1 %vm786_vm3, %v1426_v60  ;;  %v3060_v60 = vld [vmem:[%s3801_s9 + $0xa0] sm:$0xff]  }
 0xbb7   :  { %2849 = vmatpush3.bf16.msra.mxu1 %v3032_v0 }
 0xbb8   :  { %2850 = vmatprep.subr.bf16.mxu1 %v3033_v1 }
 0xbbb   :  { %2851 = vmatpush3.bf16.msra.mxu1 %v3033_v1 }
 0xbbc   :  { %2852 = vmatprep.subr.bf16.mxu1 %v3034_v2 }
 0xbbf   :  { %2853 = vmatpush3.bf16.msra.mxu1 %v3034_v2 }
 0xbc0   :  { %2854 = vmatprep.subr.bf16.mxu1 %v3035_v3 }
 0xbc3   :  { %2855 = vmatpush3.bf16.msra.mxu1 %v3035_v3 }
 0xbc4   :  { %2856 = vmatprep.subr.bf16.mxu1 %v3036_v4 }
 0xbc7   :  { %2857 = vmatpush3.bf16.msra.mxu1 %v3036_v4 }
 0xbc8   :  { %2858 = vmatprep.subr.bf16.mxu1 %v3037_v5 }
 0xbcb   :  { %2859 = vmatpush3.bf16.msra.mxu1 %v3037_v5 }
 0xc89   :  { %v2838_v6 = vpop.f32.mrb[20].mxu1 }
 0xc8a   :  { %v1484_v7 = vpop.f32.mrb[21].mxu1  ;;  %v3690_v9 = vadd.f32 %v2838_v6, %v3587_v29  ;;  %v3038_v29 = vld [vmem:[%s3795_s3 + $0xb0] sm:$0xff]  }
 0xc8b   :  { %v2839_v8 = vpop.f32.mrb[22].mxu1  ;;  %v3693_v11 = vadd.f32 %v1484_v7, %v3590_v31  ;;  %2860 = vmatprep.subr.bf16.mxu1 %v3038_v29  ;;  %v3039_v31 = vld [vmem:[%s3795_s3 + $0xb8] sm:$0xff]  }
 0xc8c   :  { %v1487_v10 = vpop.f32.mrb[23].mxu1  ;;  %v1502_v14 = vpack.c.bf16 %v3690_v9, %v3690_v9  ;;  %2861 = vmatpush3.bf16.msra.mxu1 %v3038_v29  ;;  %v3063_v29 = vld [vmem:[%s3801_s9 + $0xb8] sm:$0xff]  }
 0xc8d   :  { %v3696_v12 = vadd.f32 %v1487_v10, %v3593_v32  ;;  %2862 = vmatprep.subr.bf16.mxu1 %v3039_v31  ;;  %v3040_v32 = vld [vmem:[%s3797_s5 + $0x80] sm:$0xff]  }
 0xc8e   :  { %2868 = vmatprep.subr.bf16.mxu0 %v3040_v32 }
 0xc8f   :  { %v1501_v13 = vpack.c.bf16 %v3696_v12, %v3693_v11 }
 0xc90   :  { %2863 = vmatpush3.bf16.msra.mxu1 %v3039_v31  ;;  %v2461_v31 = vld [vmem:[#allocation11 + $0x2] ss:$0 sm:$0xff] }
 0xc91   :  { %2844 = vmatprep.mubr.msk.bf16.mxu0 %vm216_vm2, %v1501_v13  ;;  %2888 = vmatprep.subr.bf16.mxu1 %v3048_v53 }
 0xc92   :  { %2845 = vmatmul.mubr.msk.bf16.vlgmr.msra.gmra.mrb[24].mxu0 %vm216_vm2, %v1502_v14  ;;  %v3062_v14 = vld [vmem:[%s3801_s9 + $0xb0] sm:$0xff]  }
 0xc93   :  { %2869 = vmatpush3.bf16.msra.mxu0 %v3040_v32 }
 0xc94   :  { %2870 = vmatprep.subr.bf16.mxu0 %v3041_v15 }
 0xc97   :  { %2871 = vmatpush3.bf16.msra.mxu0 %v3041_v15 }
 0xc98   :  { %2872 = vmatprep.subr.bf16.mxu0 %v3042_v16 }
 0xc9b   :  { %2873 = vmatpush3.bf16.msra.mxu0 %v3042_v16 }
 0xc9c   :  { %2874 = vmatprep.subr.bf16.mxu0 %v3043_v17 }
 0xc9f   :  { %2875 = vmatpush3.bf16.msra.mxu0 %v3043_v17 }
 0xca0   :  { %2876 = vmatprep.subr.bf16.mxu0 %v3044_v18 }
 0xca3   :  { %2877 = vmatpush3.bf16.msra.mxu0 %v3044_v18 }
 0xca4   :  { %2878 = vmatprep.subr.bf16.mxu0 %v3045_v19 }
 0xca7   :  { %2879 = vmatpush3.bf16.msra.mxu0 %v3045_v19 }
 0xca8   :  { %2880 = vmatprep.subr.bf16.mxu0 %v3046_v33 }
 0xcab   :  { %2881 = vmatpush3.bf16.msra.mxu0 %v3046_v33 }
 0xcac   :  { %2882 = vmatprep.subr.bf16.mxu0 %v3047_v34 }
 0xcaf   :  { %2883 = vmatpush3.bf16.msra.mxu0 %v3047_v34 }
 0xcb0   :  { %2908 = vmatprep.subr.bf16.mxu0 %v3056_v56 }
 0xd65   :  { %v2846_v20 = vpop.f32.mrb[24].mxu0 }
 0xd66   :  { %v1567_v22 = vpop.f32.mrb[25].mxu0  ;;  %v1576_v24 = vadd.f32 %v2846_v20, %v2406_v21 }
 0xd67   :  { %v2847_v23 = vpop.f32.mrb[26].mxu0  ;;  %v1568_v26 = vadd.f32 %v2406_v21, %v1567_v22 }
 0xd68   :  { %v1570_v25 = vpop.f32.mrb[27].mxu0  ;;  %v1582_v30 = vpack.c.bf16 %v1576_v24, %v1576_v24 }
 0xd69   :  { %v1571_v27 = vadd.f32 %v2406_v21, %v1570_v25 }
 0xd6b   :  { %v1581_v28 = vpack.c.bf16 %v1571_v27, %v1568_v26  ;;  %v3064_v26 = vld [vmem:[%s3803_s11 + $0x20] sm:$0xff]   ;;  %v3065_v27 = vld [vmem:[%s3803_s11 + $0x28] sm:$0xff]  }
 0xd6d   :  { %2864 = vmatprep.mubr.bf16.mxu1 %v1581_v28 }
 0xd6e   :  { %2865 = vmatmul.mubr.bf16.vlgmr.msra.gmra.mrb[24].mxu1 %v1582_v30  ;;  %v2486_v30 = vld [vmem:[#allocation12 + $0x2] ss:$0 sm:$0xff] }
 0xd6f   :  { %2889 = vmatpush3.bf16.msra.mxu1 %v3048_v53 }
 0xd70   :  { %2890 = vmatprep.subr.bf16.mxu1 %v3049_v49 }
 0xd73   :  { %2891 = vmatpush3.bf16.msra.mxu1 %v3049_v49 }
 0xd74   :  { %2892 = vmatprep.subr.bf16.mxu1 %v3050_v50 }
 0xd77   :  { %2893 = vmatpush3.bf16.msra.mxu1 %v3050_v50 }
 0xd78   :  { %2894 = vmatprep.subr.bf16.mxu1 %v3051_v35 }
 0xd7b   :  { %2895 = vmatpush3.bf16.msra.mxu1 %v3051_v35 }
 0xd7c   :  { %2896 = vmatprep.subr.bf16.mxu1 %v3052_v36 }
 0xd7f   :  { %2897 = vmatpush3.bf16.msra.mxu1 %v3052_v36 }
 0xd80   :  { %2898 = vmatprep.subr.bf16.mxu1 %v3053_v37 }
 0xd83   :  { %2899 = vmatpush3.bf16.msra.mxu1 %v3053_v37 }
 0xd84   :  { %2900 = vmatprep.subr.bf16.mxu1 %v3054_v54 }
 0xd87   :  { %2901 = vmatpush3.bf16.msra.mxu1 %v3054_v54 }
 0xd88   :  { %2902 = vmatprep.subr.bf16.mxu1 %v3055_v55 }
 0xd8b   :  { %2903 = vmatpush3.bf16.msra.mxu1 %v3055_v55 }
 0xd8c   :  { %2928 = vmatprep.subr.bf16.mxu1 %v3064_v26 }
 0xe41   :  { %v2866_v39 = vpop.f32.mrb[24].mxu1 }
 0xe42   :  { %v1699_v40 = vadd.f32 %v2866_v39, %v2427_v38  ;;  %v1690_v41 = vpop.f32.mrb[25].mxu1  ;;  %v3252_v39 = vmov 0  }
 0xe43   :  { %v1691_v42 = vadd.f32 %v2427_v38, %v1690_v41  ;;  %v2867_v43 = vpop.f32.mrb[26].mxu1  ;;  %2957 = vset.pattern.permute.xlu0 %v3252_v39 }
 0xe44   :  { %v1693_v44 = vpop.f32.mrb[27].mxu1  ;;  %v1706_v46 = vmax.f32 %v1699_v40, 0.0 }
 0xe45   :  { %v1694_v45 = vadd.f32 %v2427_v38, %v1693_v44  ;;  %v1704_v47 = vmax.f32 %v1691_v42, 0.0  ;;  %v3251_v38 = vmov 16  }
 0xe46   :  { %v1708_v52 = vpack.c.bf16 %v1706_v46, %v1706_v46  ;;  %2955 = vset.pattern.permute.xlu1 %v3251_v38 }
 0xe47   :  { %v1705_v48 = vmax.f32 %v1694_v45, 0.0 }
 0xe49   :  { %v1707_v51 = vpack.c.bf16 %v1705_v48, %v1704_v47  ;;  %v2503_v47 = vld [vmem:[#allocation2] ss:$0 sm:$0xff]  ;;  %v2160_v48 = vld [vmem:[%s3804_s12 + $0x10] sm:$0xff] }
 0xe4b   :  { %2884 = vmatprep.mubr.bf16.mxu0 %v1707_v51 }
 0xe4c   :  { %2885 = vmatmul.mubr.bf16.vlgmr.msra.gmra.mrb[28].mxu0 %v1708_v52 }
 0xe4d   :  { %2909 = vmatpush3.bf16.msra.mxu0 %v3056_v56 }
 0xe4e   :  { %2910 = vmatprep.subr.bf16.mxu0 %v3057_v57 }
 0xe51   :  { %2911 = vmatpush3.bf16.msra.mxu0 %v3057_v57 }
 0xe52   :  { %2912 = vmatprep.subr.bf16.mxu0 %v3058_v58 }
 0xe55   :  { %2913 = vmatpush3.bf16.msra.mxu0 %v3058_v58 }
 0xe56   :  { %2914 = vmatprep.subr.bf16.mxu0 %v3059_v59 }
 0xe59   :  { %2915 = vmatpush3.bf16.msra.mxu0 %v3059_v59 }
 0xe5a   :  { %2916 = vmatprep.subr.bf16.mxu0 %v3060_v60 }
 0xe5d   :  { %2917 = vmatpush3.bf16.msra.mxu0 %v3060_v60 }
 0xe5e   :  { %2918 = vmatprep.subr.bf16.mxu0 %v3061_v61 }
 0xe61   :  { %2919 = vmatpush3.bf16.msra.mxu0 %v3061_v61 }
 0xe62   :  { %2920 = vmatprep.subr.bf16.mxu0 %v3062_v14 }
 0xe65   :  { %2921 = vmatpush3.bf16.msra.mxu0 %v3062_v14 }
 0xe66   :  { %2922 = vmatprep.subr.bf16.mxu0 %v3063_v29 }
 0xe69   :  { %2923 = vmatpush3.bf16.msra.mxu0 %v3063_v29 }
 0xf1f   :  { %v2886_v63 = vpop.f32.mrb[28].mxu0 }
 0xf20   :  { %v1825_v0 = vadd.f32 %v2886_v63, %v2452_v62  ;;  %v1816_v1 = vpop.f32.mrb[29].mxu0 }
 0xf21   :  { %v1817_v2 = vadd.f32 %v2452_v62, %v1816_v1  ;;  %v2887_v3 = vpop.f32.mrb[30].mxu0 }
 0xf22   :  { %v1819_v4 = vpop.f32.mrb[31].mxu0  ;;  %v1832_v6 = vmax.f32 %v1825_v0, 0.0 }
 0xf23   :  { %v1820_v5 = vadd.f32 %v2452_v62, %v1819_v4  ;;  %v1830_v7 = vmax.f32 %v1817_v2, 0.0 }
 0xf24   :  { %v1834_v13 = vpack.c.bf16 %v1832_v6, %v1832_v6 }
 0xf25   :  { %v1831_v8 = vmax.f32 %v1820_v5, 0.0 }
 0xf27   :  { %v1833_v10 = vpack.c.bf16 %v1831_v8, %v1830_v7 }
 0xf29   :  { %2904 = vmatprep.mubr.bf16.mxu1 %v1833_v10 }
 0xf2a   :  { %2905 = vmatmul.mubr.bf16.vlgmr.msra.gmra.mrb[28].mxu1 %v1834_v13 }
 0xf2b   :  { %2929 = vmatpush3.bf16.msra.mxu1 %v3064_v26 }
 0xf2c   :  { %2930 = vmatprep.subr.bf16.mxu1 %v3065_v27 }
 0xf2f   :  { %2931 = vmatpush3.bf16.msra.mxu1 %v3065_v27 }
 0xffd   :  { %v2906_v32 = vpop.f32.mrb[28].mxu1 }
 0xffe   :  { %v1951_v15 = vadd.f32 %v2906_v32, %v2461_v31  ;;  %v1942_v16 = vpop.f32.mrb[29].mxu1 }
 0xfff   :  { %v1943_v17 = vadd.f32 %v2461_v31, %v1942_v16  ;;  %v2907_v18 = vpop.f32.mrb[30].mxu1 }
0x1000   :  { %v1945_v19 = vpop.f32.mrb[31].mxu1  ;;  %v1958_v21 = vmax.f32 %v1951_v15, 0.0 }
0x1001   :  { %v1946_v20 = vadd.f32 %v2461_v31, %v1945_v19  ;;  %v1956_v22 = vmax.f32 %v1943_v17, 0.0 }
0x1002   :  { %v1960_v25 = vpack.c.bf16 %v1958_v21, %v1958_v21 }
0x1003   :  { %v1957_v23 = vmax.f32 %v1946_v20, 0.0 }
0x1005   :  { %v1959_v24 = vpack.c.bf16 %v1957_v23, %v1956_v22 }
0x1007   :  { %2924 = vmatprep.mubr.bf16.mxu0 %v1959_v24 }
0x1008   :  { %2925 = vmatmul.mubr.bf16.vlgmr.msra.gmra.mrb[32].mxu0 %v1960_v25 }
0x10db   :  { %v2926_v28 = vpop.f32.mrb[32].mxu0 }
0x10dc   :  { %v2068_v33 = vpop.f32.mrb[33].mxu0  ;;  %v2077_v53 = vadd.f32 %v2926_v28, %v2486_v30 }
0x10dd   :  { %v2927_v34 = vpop.f32.mrb[34].mxu0  ;;  %v2069_v50 = vadd.f32 %v2486_v30, %v2068_v33 }
0x10de   :  { %v2071_v49 = vpop.f32.mrb[35].mxu0  ;;  %v2083_v37 = vpack.c.bf16 %v2077_v53, %v2077_v53 }
0x10df   :  { %v2072_v35 = vadd.f32 %v2486_v30, %v2071_v49 }
0x10e1   :  { %v2082_v36 = vpack.c.bf16 %v2072_v35, %v2069_v50 }
0x10e3   :  { %2932 = vmatprep.mubr.msk.bf16.mxu1 %vm786_vm3, %v2082_v36 }
0x10e4   :  { %2933 = vmatmul.mubr.msk.bf16.vlgmr.msra.gmra.mrb[32].mxu1 %vm786_vm3, %v2083_v37 }
0x11b7   :  { %v2934_v40 = vpop.f32.mrb[32].mxu1 }
0x11b8   :  { %v2157_v41 = vadd.f32 %v2934_v40, %v3690_v9  ;;  %v2141_v42 = vpop.f32.mrb[33].mxu1  ;;  %v2159_v9 = vld [vmem:[%s3804_s12 + $0x8] sm:$0xff] }
0x11b9   :  { %v2935_v43 = vpop.f32.mrb[34].mxu1  ;;  %v2155_v46 = vadd.f32 %v2141_v42, %v3693_v11  ;;  %v2158_v11 = vld [vmem:[%s3804_s12] sm:$0xff]  ;;  %s3253_s12 = smov [#allocation14]  }
0x11ba   :  { %2173 = vperm.xlu1 %2955, %v2157_v41   ;;  %v2144_v44 = vpop.f32.mrb[35].mxu1  ;;  %s2246_s21 = sshll.u32 %s3253_s12, 4  ;;  %s2247_s21 = int_to_ptr.vmem [resolvable:$true] %s2246_s21 }
0x11bb   :  { %v2156_v45 = vadd.f32 %v2144_v44, %v3696_v12  ;;  %s3208_s1 = scalar_lea.vmem %s2247_s21, 32  ;;  %p3213_p7 = scmp.lt.s32.totalorder %s2247_s21, %s2247_s21 }
0x11bc   :  { %p3209_p6 = scmp.ne.s32.totalorder %s2247_s21, %s3208_s1  ;;  %p3214_p8 = scmp.lt.s32.totalorder %s3208_s1, %s3208_s1 }
0x11be   :  { %2168 = vperm.xlu1 %2955, %v2156_v45   ;;  %p3215_p9 = por %p3214_p8, %p3213_p7 }
0x11c0   :  { %p3216_p10 = pnand %p3215_p9, %p3209_p6 }
0x11c2   :  { %2163 = vperm.xlu1 %2955, %v2155_v46  }
0x11c6   :  { %2956 = vset.pattern.permute.xlu1 %v3252_v39 }
0x11c7   :  { %2215 = vperm.xlu1 %2956, %v2503_v47  }
0x1239   :  { %v2174_v51 = vpop.permute.xlu1 %2173 }
0x123a   :  { %v2178_v52 = vmul.f32 %v2174_v51, %v2160_v48 }
0x123c   :  { %v2193_v12 = vrot.slane %v2178_v52, 4 }
0x123d   :  { %v2169_v54 = vpop.permute.xlu1 %2168 }
0x123e   :  { %v2177_v55 = vmul.f32 %v2169_v54, %v2159_v9  ;;  %v2198_v60 = vsel %vm2181_vm4, %v2193_v12, 0.0 }
0x1240   :  { %v2192_v56 = vrot.slane %v2177_v55, 4  ;;  %v2182_v62 = vsel %vm2181_vm4, %v2177_v55, 0.0 }
0x1241   :  { %v2164_v57 = vpop.permute.xlu1 %2163 }
0x1242   :  { %v2194_v58 = vsel %vm223_vm1, %v2192_v56, %v2193_v12  ;;  %v2176_v59 = vmul.f32 %v2164_v57, %v2158_v11 }
0x1243   :  { %v2197_v61 = vsel %vm2179_vm5, %v2194_v58, 0.0 }
0x1244   :  { %v2199_v63 = vadd.f32 %v2198_v60, %v2197_v61  ;;  %v2180_v0 = vsel %vm2179_vm5, %v2176_v59, 0.0 }
0x1245   :  { %v2183_v1 = vadd.f32 %v2182_v62, %v2180_v0 }
0x1246   :  { %v2200_v2 = vrot.slane %v2199_v63, 4  ;;  %v2216_v32 = vpop.permute.xlu1 %2215 }
0x1247   :  { %v2184_v3 = vrot.slane %v2183_v1, 4 }
0x1248   :  { %v2201_v4 = vadd.f32 %v2200_v2, %v2199_v63 }
0x1249   :  { %v2185_v5 = vadd.f32 %v2184_v3, %v2183_v1 }
0x124a   :  { %v2202_v6 = vrot.slane %v2201_v4, 2 }
0x124b   :  { %v2186_v7 = vrot.slane %v2185_v5, 2 }
0x124c   :  { %v2203_v8 = vadd.f32 %v2202_v6, %v2201_v4 }
0x124d   :  { %v2187_v10 = vadd.f32 %v2186_v7, %v2185_v5 }
0x124e   :  { %v2204_v13 = vrot.slane %v2203_v8, 1 }
0x124f   :  { %v2188_v14 = vrot.slane %v2187_v10, 1 }
0x1250   :  { %v2205_v29 = vadd.f32 %v2204_v13, %v2203_v8 }
0x1251   :  { %v2189_v31 = vadd.f32 %v2188_v14, %v2187_v10 }
0x1253   :  { %v2207_v15 = vsel %vm2206_vm6, %v2189_v31, %v2205_v29 }
0x1254   :  { %v2218_v16 = vadd.f32 %v2216_v32, %v2207_v15 }
0x1256   :  { %v2219_v17 = vmax.f32 %v2218_v16, 0.0 }
0x1258   :  { %v2221_v18 = vsel %vm2220_vm7, %v2219_v17, -inf }
0x1259   :  { %2222 = vmax.xlane.f32.xlu1 %v2221_v18 }
0x12e6   :  { %v2223_v19 = vpop.xlane.xlu1 %2222 }
0x12e7   :  { %v2224_v20 = vsub.f32 %v2219_v17, %v2223_v19 }
0x12e9   :  { %v2225_v21 = vmul.f32 1.442695, %v2224_v20 }
0x12eb   :  { %3072 = vpow2.f32 %v2225_v21 }
0x12f5   :  { %v3073_v22 = vpop.eup %3072 }
0x12f6   :  { %v2227_v23 = vsel %vm2220_vm7, %v3073_v22, 0.0 }
0x12f7   :  { %2228 = vadd.xlane.f32.xlu0 %v2227_v23 }
0x1384   :  { %v2229_v24 = vpop.xlane.xlu0 %2228 }
0x1385   :  { %3074 = vrcp.f32 %v2229_v24 }
0x138f   :  { %v3075_v25 = vpop.eup %3074 }
0x1390   :  { %v2231_v26 = vmul.f32 %v3075_v25, %v3073_v22 }
0x1392   :  { %2233 = vrot.lane.b32.xlu1 %v2231_v26, %s3243_s28 }
0x1404   :  { %v2234_v27 = vpop.permute.xlu1 %2233 }
0x1405   :  { %v2237_v28 = vsel %vm2236_vm8, 0.0, %v2234_v27 }
0x1406   :  { %2239 = vst.msk [vmem:[#allocation14] sm:$0x3] %vm2238_vm9, %v2237_v28 }
0x1407   :  { %3219 = shalt.err (!%p3216_p10)
}
0x1408   :  { %s3220_s29 = scalar_lea.hbm %s3806_s14, 32 }
0x1409   :  { %p3221_p11 = scmp.ne.s32.totalorder %s3806_s14, %s3220_s29  ;;  %p3224_p12 = scmp.lt.u32.totalorder %s3220_s29, %s3806_s14 }
0x140b   :  { %p3226_p13 = pnand %p3224_p12, %p3221_p11 }
0x140d   :  { %3229 = shalt.err (!%p3226_p13)
}
0x140e   :  { %2249 = dma.vmem_to_hbm [thread:$0]  %s2247_s21, 32, %s3806_s14, [#allocation5]  }
0x140f   :  { %3238 = dma.done.wait [#allocation5], 32  }
0x1410   :  { %3239 = vsyncadd [#allocation5], 4294967264 }
0x1411   :  { %2253 = vsyncpa [#allocation4], 1 }
0x1412   :  { %2254 = vsyncpa [#allocation7], 1 }
0x1413   :  { %2255 = vsyncpa [#allocation10], 1 }
0x1414   :  { %2256 = vsyncpa [#allocation13], 1 }
0x1415   :  { %2257 = vsyncpa [#allocation5], 1 }

</bundles_post_ra>
